<compile_context>
chip_gen: v7x
topology: tpu7x:2x2x1
jax: 0.10.0
libtpu: 0.0.40
codegen_flags: <defaults>
</compile_context>

<pallas_src>
import functools

import jax
import jax.numpy as jnp
from jax import lax
from jax.experimental import pallas as pl
from jax.experimental.pallas import tpu as pltpu


def _recip(x):
    """EUP approximate reciprocal + one Newton step (~f32 accuracy)."""
    r = pl.reciprocal(x, approx=True)
    return r * (jnp.float32(2.0) - x * r)


def _roundtrip_kernel(a_ref, b_ref, t_ref, out_ref,
                      m_ref, l_ref, acc_ref, *, weight, inv_na):
    j = pl.program_id(0)

    @pl.when(j == 0)
    def _init():
        m_ref[...] = jnp.full_like(m_ref, -jnp.inf)
        l_ref[...] = jnp.zeros_like(l_ref)
        acc_ref[...] = jnp.zeros_like(acc_ref)

    a = a_ref[...]            # [Na, D]   (resident in VMEM, native dtype)
    bj = b_ref[...]           # [tnb, D]  (streamed / double-buffered)
    mm_dtype = a.dtype

    # sim_j = a @ b_j.T  via dot_general (contract dim 1 with dim 1, no .T)
    sim = lax.dot_general(a, bj, (((1,), (1,)), ((), ())),
                          preferred_element_type=jnp.float32)     # [Na, tnb]

    # Column softmax (softmax over axis 0) — exact per tile, every tile holds
    # all Na rows of its columns.  col_soft[i, k] == b2a[k, i].
    col_max = jnp.max(sim, axis=0, keepdims=True)                 # [1, tnb]
    col_exp = jnp.exp(sim - col_max)
    col_soft = col_exp * _recip(jnp.sum(col_exp, axis=0, keepdims=True))

    # Online row softmax (running max / sum across Nb tiles).
    m_prev = m_ref[...]                                           # [Na, 1]
    m_new = jnp.maximum(m_prev, jnp.max(sim, axis=1, keepdims=True))
    alpha = jnp.exp(m_prev - m_new)                               # [Na, 1]
    p = jnp.exp(sim - m_new)                                      # [Na, tnb]
    l_ref[...] = alpha * l_ref[...] + jnp.sum(p, axis=1, keepdims=True)

    # acc += p @ col_soft.T   (contract the tnb dim of both, f32 accumulation)
    pv = lax.dot_general(p.astype(mm_dtype), col_soft.astype(mm_dtype),
                         (((1,), (1,)), ((), ())),
                         preferred_element_type=jnp.float32)      # [Na, Na]
    acc_ref[...] = alpha * acc_ref[...] + pv
    m_ref[...] = m_new

    @pl.when(j == pl.num_programs(0) - 1)
    def _finalize():
        inv_l = _recip(l_ref[...])                                # [Na, 1]
        inputs = acc_ref[...] * inv_l                             # [Na, Na]
        t = t_ref[...].astype(jnp.float32)
        total = jnp.sum(t * jnp.log(jnp.float32(1e-8) + inputs))
        # mean over rows of the per-row sums == total / Na
        out_ref[0, 0] = -jnp.float32(weight) * total * jnp.float32(inv_na)


def roundtrip_loss(a, b, targets, weight=1.0):
    """Pallas implementation of RoundTripLoss.forward. Returns a scalar f32."""
    na, d = a.shape
    nb, d2 = b.shape
    assert d == d2
    assert targets.shape == (na, na)

    # Nb tile: prefer large MXU-aligned tiles that divide Nb, else one tile.
    tnb = next((t for t in (512, 256, 128) if nb % t == 0), nb)
    grid = (nb // tnb,)

    a_bytes = na * d * jnp.dtype(a.dtype).itemsize
    b_bytes = 2 * tnb * d * jnp.dtype(b.dtype).itemsize          # double-buffered
    t_bytes = na * na * jnp.dtype(targets.dtype).itemsize
    scratch_bytes = na * na * 4 + 2 * na * 128 * 4
    temp_bytes = 6 * na * tnb * 4                                 # sim/exp/p/col_soft
    vmem_est = a_bytes + b_bytes + t_bytes + scratch_bytes + temp_bytes
    vmem_limit = int(min(64 * 1024 * 1024, max(16 * 1024 * 1024, 2 * vmem_est)))

    out = pl.pallas_call(
        functools.partial(_roundtrip_kernel,
                          weight=float(weight), inv_na=1.0 / float(na)),
        out_shape=jax.ShapeDtypeStruct((1, 1), jnp.float32),
        grid_spec=pltpu.PrefetchScalarGridSpec(
            num_scalar_prefetch=0,
            grid=grid,
            in_specs=[
                pl.BlockSpec((na, d), lambda j: (0, 0)),    # a: DMA'd once, resident
                pl.BlockSpec((tnb, d), lambda j: (j, 0)),   # b: streamed per tile
                pl.BlockSpec((na, na), lambda j: (0, 0)),   # targets: DMA'd once
            ],
            out_specs=pl.BlockSpec(memory_space=pltpu.MemorySpace.SMEM),
            scratch_shapes=[
                pltpu.VMEM((na, 1), jnp.float32),           # running row max
                pltpu.VMEM((na, 1), jnp.float32),           # running row sum
                pltpu.VMEM((na, na), jnp.float32),          # output accumulator
            ],
        ),
        compiler_params=pltpu.CompilerParams(
            dimension_semantics=("arbitrary",),
            vmem_limit_bytes=vmem_limit,
        ),
    )(a, b, targets)
    return out[0, 0]


def _reference(a, b, targets, weight=1.0):
    sim = a @ b.T
    a2b = jax.nn.softmax(sim, axis=1)
    b2a = jax.nn.softmax(sim.T, axis=1)
    inputs = a2b @ b2a
    return -weight * jnp.mean(jnp.sum(targets * jnp.log(1e-8 + inputs), axis=1))


if __name__ == "__main__":
    key = jax.random.PRNGKey(0)
    k1, k2, k3 = jax.random.split(key, 3)

    # Small but MXU-aligned demo shapes; Nb=384 -> 3 grid steps, exercising
    # the online-softmax init / update / finalize path.
    na, nb, d = 128, 384, 128
    a = jax.random.normal(k1, (na, d), dtype=jnp.float32)
    b = jax.random.normal(k2, (nb, d), dtype=jnp.float32)
    logits = jax.random.normal(k3, (na, na), dtype=jnp.float32)
    targets = jax.nn.softmax(logits, axis=1)   # each row a valid distribution

    loss = roundtrip_loss(a, b, targets, weight=1.0)
    loss = jax.block_until_ready(loss)

    ref = jax.block_until_ready(_reference(a, b, targets, weight=1.0))
    assert jnp.allclose(loss, ref, rtol=1e-5, atol=1e-5), (loss, ref)

    print("KERNEL_OK")
</pallas_src>

<mosaic_0001>
module attributes {stable_mosaic.version = 11 : i64} {
  func.func @_roundtrip_kernel(%arg0: i32, %arg1: memref<128x128xf32, #tpu.memory_space<vmem>>, %arg2: memref<128x128xf32, #tpu.memory_space<vmem>>, %arg3: memref<128x128xf32, #tpu.memory_space<vmem>>, %arg4: memref<1x1xf32, #tpu.memory_space<smem>>, %arg5: memref<128x1xf32, #tpu.memory_space<vmem>>, %arg6: memref<128x1xf32, #tpu.memory_space<vmem>>, %arg7: memref<128x128xf32, #tpu.memory_space<vmem>>) attributes {dimension_semantics = [#tpu.dimension_semantics<arbitrary>], iteration_bounds = array<i64: 3>, scalar_prefetch = 0 : i64, scratch_operands = 3 : i64, tpu.core_type = #tpu.core_type<tc>, window_params = [{pipeline_mode = #tpu.pipeline_mode<synchronous>, transform_indices = @transform_0, window_bounds = array<i64: 128, 128>}, {transform_indices = @transform_1, window_bounds = array<i64: 128, 128>}, {pipeline_mode = #tpu.pipeline_mode<synchronous>, transform_indices = @transform_2, window_bounds = array<i64: 128, 128>}, {transform_indices = @transform_3, window_bounds = array<i64: 1, 1>}]} {
    %c0_i32 = arith.constant 0 : i32
    %0 = arith.cmpi eq, %arg0, %c0_i32 : i32
    %1 = arith.extui %0 : i1 to i32
    %c0_i32_0 = arith.constant 0 : i32
    %2 = arith.cmpi ne, %1, %c0_i32_0 : i32
    scf.if %2 {
      %cst_23 = arith.constant 0xFF800000 : f32
      %45 = vector.broadcast %cst_23 : f32 to vector<128x1xf32>
      %c0_24 = arith.constant 0 : index
      %c0_25 = arith.constant 0 : index
      %46 = vector.load %arg5[%c0_24, %c0_25] : memref<128x1xf32, #tpu.memory_space<vmem>>, vector<128x1xf32>
      tpu.vector_store %arg5[%c0_24, %c0_25], %45 {strides = array<i32>} : memref<128x1xf32, #tpu.memory_space<vmem>>, vector<128x1xf32>,
      %cst_26 = arith.constant 0.000000e+00 : f32
      %47 = vector.broadcast %cst_26 : f32 to vector<128x1xf32>
      %c0_27 = arith.constant 0 : index
      %c0_28 = arith.constant 0 : index
      %48 = vector.load %arg6[%c0_27, %c0_28] : memref<128x1xf32, #tpu.memory_space<vmem>>, vector<128x1xf32>
      tpu.vector_store %arg6[%c0_27, %c0_28], %47 {strides = array<i32>} : memref<128x1xf32, #tpu.memory_space<vmem>>, vector<128x1xf32>,
      %cst_29 = arith.constant 0.000000e+00 : f32
      %49 = vector.broadcast %cst_29 : f32 to vector<128x128xf32>
      %c0_30 = arith.constant 0 : index
      %c0_31 = arith.constant 0 : index
      %50 = vector.load %arg7[%c0_30, %c0_31] : memref<128x128xf32, #tpu.memory_space<vmem>>, vector<128x128xf32>
      tpu.vector_store %arg7[%c0_30, %c0_31], %49 {strides = array<i32>} : memref<128x128xf32, #tpu.memory_space<vmem>>, vector<128x128xf32>,
    } else {
    }
    %c0 = arith.constant 0 : index
    %c0_1 = arith.constant 0 : index
    %3 = vector.load %arg1[%c0, %c0_1] : memref<128x128xf32, #tpu.memory_space<vmem>>, vector<128x128xf32>
    %c0_2 = arith.constant 0 : index
    %c0_3 = arith.constant 0 : index
    %4 = vector.load %arg2[%c0_2, %c0_3] : memref<128x128xf32, #tpu.memory_space<vmem>>, vector<128x128xf32>
    %cst = arith.constant dense<0.000000e+00> : vector<128x128xf32>
    %5 = tpu.matmul %3, %4, %cst {dimension_numbers = #tpu.dot_dimension_numbers<[1], [1], [0], [0], [0, 0, 1, 0], [], []>} : vector<128x128xf32>, vector<128x128xf32>, vector<128x128xf32> -> vector<128x128xf32>
    %cst_4 = arith.constant dense<0xFF800000> : vector<128xf32>
    %6 = vector.multi_reduction <maximumf>, %5, %cst_4 [0] : vector<128x128xf32> to vector<128xf32>
    %7 = vector.shape_cast %6 : vector<128xf32> to vector<1x128xf32>
    %8 = vector.broadcast %7 : vector<1x128xf32> to vector<128x128xf32>
    %9 = arith.subf %5, %8 : vector<128x128xf32>
    %10 = math.exp %9 : vector<128x128xf32>
    %cst_5 = arith.constant dense<0.000000e+00> : vector<128xf32>
    %11 = vector.multi_reduction <add>, %10, %cst_5 [0] : vector<128x128xf32> to vector<128xf32>
    %12 = vector.shape_cast %11 : vector<128xf32> to vector<1x128xf32>
    %13 = tpu.reciprocal %12 {approx = true} : vector<1x128xf32> -> vector<1x128xf32>
    %14 = arith.mulf %12, %13 : vector<1x128xf32>
    %cst_6 = arith.constant 2.000000e+00 : f32
    %15 = vector.broadcast %cst_6 : f32 to vector<1x128xf32>
    %16 = arith.subf %15, %14 : vector<1x128xf32>
    %17 = arith.mulf %13, %16 : vector<1x128xf32>
    %18 = vector.broadcast %17 : vector<1x128xf32> to vector<128x128xf32>
    %19 = arith.mulf %10, %18 : vector<128x128xf32>
    %c0_7 = arith.constant 0 : index
    %c0_8 = arith.constant 0 : index
    %20 = vector.load %arg5[%c0_7, %c0_8] : memref<128x1xf32, #tpu.memory_space<vmem>>, vector<128x1xf32>
    %cst_9 = arith.constant dense<0xFF800000> : vector<128xf32>
    %21 = vector.multi_reduction <maximumf>, %5, %cst_9 [1] : vector<128x128xf32> to vector<128xf32>
    %22 = vector.shape_cast %21 : vector<128xf32> to vector<128x1xf32>
    %23 = arith.maximumf %20, %22 : vector<128x1xf32>
    %24 = arith.subf %20, %23 : vector<128x1xf32>
    %25 = math.exp %24 : vector<128x1xf32>
    %26 = vector.broadcast %23 : vector<128x1xf32> to vector<128x128xf32>
    %27 = arith.subf %5, %26 : vector<128x128xf32>
    %28 = math.exp %27 : vector<128x128xf32>
    %c0_10 = arith.constant 0 : index
    %c0_11 = arith.constant 0 : index
    %29 = vector.load %arg6[%c0_10, %c0_11] : memref<128x1xf32, #tpu.memory_space<vmem>>, vector<128x1xf32>
    %30 = arith.mulf %25, %29 : vector<128x1xf32>
    %cst_12 = arith.constant dense<0.000000e+00> : vector<128xf32>
    %31 = vector.multi_reduction <add>, %28, %cst_12 [1] : vector<128x128xf32> to vector<128xf32>
    %32 = vector.shape_cast %31 : vector<128xf32> to vector<128x1xf32>
    %33 = arith.addf %30, %32 : vector<128x1xf32>
    %c0_13 = arith.constant 0 : index
    %c0_14 = arith.constant 0 : index
    %34 = vector.load %arg6[%c0_13, %c0_14] : memref<128x1xf32, #tpu.memory_space<vmem>>, vector<128x1xf32>
    tpu.vector_store %arg6[%c0_13, %c0_14], %33 {strides = array<i32>} : memref<128x1xf32, #tpu.memory_space<vmem>>, vector<128x1xf32>,
    %cst_15 = arith.constant dense<0.000000e+00> : vector<128x128xf32>
    %35 = tpu.matmul %28, %19, %cst_15 {dimension_numbers = #tpu.dot_dimension_numbers<[1], [1], [0], [0], [0, 0, 1, 0], [], []>} : vector<128x128xf32>, vector<128x128xf32>, vector<128x128xf32> -> vector<128x128xf32>
    %c0_16 = arith.constant 0 : index
    %c0_17 = arith.constant 0 : index
    %36 = vector.load %arg7[%c0_16, %c0_17] : memref<128x128xf32, #tpu.memory_space<vmem>>, vector<128x128xf32>
    %37 = vector.broadcast %25 : vector<128x1xf32> to vector<128x128xf32>
    %38 = arith.mulf %37, %36 : vector<128x128xf32>
    %39 = arith.addf %38, %35 : vector<128x128xf32>
    %c0_18 = arith.constant 0 : index
    %c0_19 = arith.constant 0 : index
    %40 = vector.load %arg7[%c0_18, %c0_19] : memref<128x128xf32, #tpu.memory_space<vmem>>, vector<128x128xf32>
    tpu.vector_store %arg7[%c0_18, %c0_19], %39 {strides = array<i32>} : memref<128x128xf32, #tpu.memory_space<vmem>>, vector<128x128xf32>,
    %c0_20 = arith.constant 0 : index
    %c0_21 = arith.constant 0 : index
    %41 = vector.load %arg5[%c0_20, %c0_21] : memref<128x1xf32, #tpu.memory_space<vmem>>, vector<128x1xf32>
    tpu.vector_store %arg5[%c0_20, %c0_21], %23 {strides = array<i32>} : memref<128x1xf32, #tpu.memory_space<vmem>>, vector<128x1xf32>,
    %c2_i32 = arith.constant 2 : i32
    %42 = arith.cmpi eq, %arg0, %c2_i32 : i32
    %43 = arith.extui %42 : i1 to i32
    %c0_i32_22 = arith.constant 0 : i32
    %44 = arith.cmpi ne, %43, %c0_i32_22 : i32
    scf.if %44 {
      %c0_23 = arith.constant 0 : index
      %c0_24 = arith.constant 0 : index
      %45 = vector.load %arg6[%c0_23, %c0_24] : memref<128x1xf32, #tpu.memory_space<vmem>>, vector<128x1xf32>
      %46 = tpu.reciprocal %45 {approx = true} : vector<128x1xf32> -> vector<128x1xf32>
      %47 = arith.mulf %45, %46 : vector<128x1xf32>
      %cst_25 = arith.constant 2.000000e+00 : f32
      %48 = vector.broadcast %cst_25 : f32 to vector<128x1xf32>
      %49 = arith.subf %48, %47 : vector<128x1xf32>
      %50 = arith.mulf %46, %49 : vector<128x1xf32>
      %c0_26 = arith.constant 0 : index
      %c0_27 = arith.constant 0 : index
      %51 = vector.load %arg7[%c0_26, %c0_27] : memref<128x128xf32, #tpu.memory_space<vmem>>, vector<128x128xf32>
      %52 = vector.broadcast %50 : vector<128x1xf32> to vector<128x128xf32>
      %53 = arith.mulf %51, %52 : vector<128x128xf32>
      %c0_28 = arith.constant 0 : index
      %c0_29 = arith.constant 0 : index
      %54 = vector.load %arg3[%c0_28, %c0_29] : memref<128x128xf32, #tpu.memory_space<vmem>>, vector<128x128xf32>
      %cst_30 = arith.constant 9.99999993E-9 : f32
      %55 = vector.broadcast %cst_30 : f32 to vector<128x128xf32>
      %56 = arith.addf %55, %53 : vector<128x128xf32>
      %57 = math.log %56 : vector<128x128xf32>
      %58 = arith.mulf %54, %57 : vector<128x128xf32>
      %59 = vector.shape_cast %58 : vector<128x128xf32> to vector<1x128x128xf32>
      %cst_31 = arith.constant dense<0.000000e+00> : vector<1xf32>
      %60 = vector.multi_reduction <add>, %59, %cst_31 [1, 2] : vector<1x128x128xf32> to vector<1xf32>
      %61 = vector.shape_cast %60 : vector<1xf32> to vector<1x1x1xf32>
      %62 = vector.extract %61[0, 0, 0] : f32 from vector<1x1x1xf32>
      %cst_32 = arith.constant 0.000000e+00 : f32
      %cst_33 = arith.constant 1.000000e+00 : f32
      %63 = arith.subf %cst_32, %cst_33 : f32
      %64 = arith.mulf %63, %62 : f32
      %cst_34 = arith.constant 7.812500e-03 : f32
      %65 = arith.mulf %64, %cst_34 : f32
      %c0_35 = arith.constant 0 : index
      %c0_36 = arith.constant 0 : index
      %66 = memref.load %arg4[%c0_35, %c0_36] : memref<1x1xf32, #tpu.memory_space<smem>>
      memref.store %65, %arg4[%c0_35, %c0_36] : memref<1x1xf32, #tpu.memory_space<smem>>
    } else {
    }
    return
  }
  func.func @transform_0(%arg0: i32) -> (i32, i32) {
    %c0_i32 = arith.constant 0 : i32
    %c0_i32_0 = arith.constant 0 : i32
    %c0_i32_1 = arith.constant 0 : i32
    return %c0_i32, %c0_i32_0 : i32, i32
  }
  func.func @transform_1(%arg0: i32) -> (i32, i32) {
    %c0_i32 = arith.constant 0 : i32
    %c0_i32_0 = arith.constant 0 : i32
    return %arg0, %c0_i32 : i32, i32
  }
  func.func @transform_2(%arg0: i32) -> (i32, i32) {
    %c0_i32 = arith.constant 0 : i32
    %c0_i32_0 = arith.constant 0 : i32
    %c0_i32_1 = arith.constant 0 : i32
    return %c0_i32, %c0_i32_0 : i32, i32
  }
  func.func @transform_3(%arg0: i32) -> (i32, i32) {
    %c0_i32 = arith.constant 0 : i32
    %c0_i32_0 = arith.constant 0 : i32
    %c0_i32_1 = arith.constant 0 : i32
    return %c0_i32, %c0_i32_0 : i32, i32
  }
}

</mosaic_0001>

<bundles_post_ra>
// kernel: tpu_custom_call.1
= control target key start
LH: loop header
LB: loop body
LE: loop exit
PB: predicated region body
PF: predicated region fallthrough
CT: control target
= control target key end

     0   :  { %8 = vsyncpa [#allocation6], 0  ;;  %s2850_s0 = inlined_call_operand.hbm [shape: f32[128,128], index: 0, kind: input, shape index: {}]   ;;  %s2851_s1 = inlined_call_operand.hbm [shape: f32[384,128], index: 1, kind: input, shape index: {}]   ;;  %s2852_s2 = inlined_call_operand.hbm [shape: f32[128,128], index: 2, kind: input, shape index: {}]   ;;  %s2853_s3 = inlined_call_operand.hbm [shape: f32[1,1], index: 3, kind: output, shape index: {}]  }
   0x1   :  { %9 = vsyncpa [#allocation9], 0 }
   0x2   :  { %11 = vsyncpa [#allocation9 + $0x1], 0 }
   0x3   :  { %12 = vsyncpa [#allocation7], 0  ;;  %s2246_s12 = smov 0   ;;  %s2248_s13 = smov 0  }
   0x4   :  { %s2250_s14 = smov 0   ;;  %s2252_s15 = smov 0  }
   0x5 LB: > { %s2265_s16 = sadd.s32 4294967295, %s2214_s15   ;;  %s2268_s17 = sadd.s32 1, %s2214_s15   ;;  %s2214_s15 = sphi %s2252_s15, %s2874_s15   ;;  %s2210_s14 = sphi %s2250_s14, %s2873_s14   ;;  %s2206_s13 = sphi %s2248_s13, %s2872_s13   ;;  %s2202_s12 = sphi %s2246_s12, %s2871_s12  }
   0x6   : > { %s43_s18 = ssub.s32 %s2214_s15, %s2268_s17  ;;  %s46_s19 = sadd.s32 1, %s2210_s14 }
   0x7   : > { %p44_p0 = scmp.eq.s32.totalorder %s43_s18, 0  ;;  %p53_p1 = scmp.ne.s32.totalorder %s2210_s14, %s2206_s13 }
   0x8   : > { %p54_p2 = scmp.eq.s32.totalorder %s2214_s15, 0  ;;  %p59_p3 = scmp.ne.s32.totalorder %s2206_s13, %s2202_s12 }
   0x9   : > { %s2278_s20 = scalar_select %p44_p0, %s2210_s14, %s46_s19  }
   0xa   : > { %p2280_p4 = por %p54_p2, %p53_p1  ;;  %p2854_p5 = scmp.eq.s32.totalorder %s2265_s16, 0 }
   0xb   : > { %p1571_p6 = scmp.ge.s32.totalorder %s2214_s15, 1  ;;  %p112_p7 = scmp.lt.s32.totalorder %s2214_s15, 4 }
   0xc   : > { %p2289_p8 = por %p2854_p5, %p59_p3  ;;  %s2216_s24 = smov [#allocation10]  }
   0xd   : > { %p2294_p10 = pnand %p1571_p6, %p112_p7  ;;  %s137_s25 = sshll.u32 %s2216_s24, 4  ;;  %s138_s25 = int_to_ptr.vmem [resolvable:$true] %s137_s25 }
   0xe   : > { %s2859_s22 = scalar_select %p2289_p8, 1, 0 }
   0xf   : > { %s2860_s23 = scalar_select %p2294_p10, 1, 0 }
  0x10   : > { %p1845_p11 = pneg %p2294_p10  ;;  %p1858_p13 = scmp.lt.s32.totalorder %s2214_s15, 3 }
  0x11   : > { %s2070_s30 = scalar_lea.hbm %s2852_s2, 2048 }
  0x12   : > { %p2302_p12 = pnand %p1845_p11, %p2854_p5  ;;  %p2309_p0 = pnand %p1858_p13, %p2280_p4 }
  0x13   : > { %p2071_p1 = scmp.ne.s32.totalorder %s2852_s2, %s2070_s30  ;;  %p2077_p4 = scmp.lt.u32.totalorder %s2070_s30, %s2852_s2 }
  0x14   : > { %s2862_s27 = scalar_select %p2309_p0, 1, 0 }
  0x15   : > { %p2072_p2 = pneg %p2302_p12 }
  0x17   : > { %p2073_p3 = pnand %p2072_p2, %p2071_p1 }
  0x19   : > { %p2074_p6 = pneg %p2073_p3 }
  0x1b   : > { %p2079_p7 = pnand %p2077_p4, %p2074_p6 }
  0x1d   : > { %2082 = shalt.err (!%p2079_p7)
}
  0x1e   : > { %s2083_s8 = scalar_lea.vmem %s138_s25, 2048  ;;  %p2091_p5 = scmp.lt.s32.totalorder %s138_s25, %s138_s25 }
  0x1f   : > { %p2084_p11 = scmp.ne.s32.totalorder %s138_s25, %s2083_s8  ;;  %p2092_p8 = scmp.lt.s32.totalorder %s2083_s8, %s2083_s8 }
  0x21   : > { %p2086_p13 = pnand %p2084_p11, %p2072_p2  ;;  %p2093_p10 = por %p2092_p8, %p2091_p5 }
  0x23   : > { %p2087_p9 = pneg %p2086_p13 }
  0x25   : > { %p2094_p0 = pnand %p2093_p10, %p2087_p9 }
  0x27   : > { %2097 = shalt.err (!%p2094_p0)
}
  0x28   : > { %s2217_s9 = smov 128   ;;  %s2218_s10 = smov 8  }
  0x29   : > { %1851 = dma.hbm_to_vmem [thread:$0]  (!%p2302_p12), %s2852_s2, 2048, %s138_s25, [#allocation9], %s2217_s9, %s2217_s9, %s2218_s10  }
  0x2a   : > { %s2219_s18 = smov [#allocation5]   ;;  %s151_s21 = sand.u32 1, %s2214_s15  }
  0x2b   : > { %s124_s19 = sshll.u32 %s2219_s18, 4  ;;  %s2098_s29 = scalar_lea.hbm %s2850_s0, 2048  ;;  %s125_s19 = int_to_ptr.vmem [resolvable:$true] %s124_s19 }
  0x2c   : > { %p2099_p5 = scmp.ne.s32.totalorder %s2850_s0, %s2098_s29  ;;  %p2105_p10 = scmp.lt.u32.totalorder %s2098_s29, %s2850_s0 }
  0x2e   : > { %p2101_p8 = pnand %p2099_p5, %p2072_p2 }
  0x30   : > { %p2102_p9 = pneg %p2101_p8 }
  0x32   : > { %p2107_p0 = pnand %p2105_p10, %p2102_p9 }
  0x34   : > { %2110 = shalt.err (!%p2107_p0)
}
  0x35   : > { %s2111_s25 = scalar_lea.vmem %s125_s19, 2048  ;;  %p2119_p4 = scmp.lt.s32.totalorder %s125_s19, %s125_s19 }
  0x36   : > { %p2112_p1 = scmp.ne.s32.totalorder %s125_s19, %s2111_s25  ;;  %p2120_p7 = scmp.lt.s32.totalorder %s2111_s25, %s2111_s25 }
  0x38   : > { %p2114_p3 = pnand %p2112_p1, %p2072_p2  ;;  %p2121_p11 = por %p2120_p7, %p2119_p4 }
  0x3a   : > { %p2115_p6 = pneg %p2114_p3 }
  0x3c   : > { %p2122_p13 = pnand %p2121_p11, %p2115_p6 }
  0x3e   : > { %2125 = shalt.err (!%p2122_p13)
}
  0x3f   : > { %1848 = dma.hbm_to_vmem [thread:$0]  (!%p2302_p12), %s2850_s0, 2048, %s125_s19, [#allocation6], %s2217_s9, %s2217_s9, %s2218_s10  }
  0x40   : > { %s153_s11 = sand.u32 1, %s2210_s14   ;;  %s1588_s12 = sshll.u32 %s2214_s15, 11 }
  0x41   : > { %s1575_s18 = sshll.u32 %s153_s11, 7  ;;  %s2367_s29 = scalar_lea.hbm %s2851_s1, %s1588_s12 }
  0x42   : > { %s155_s26 = scalar_lea.vmem [#allocation8], %s1575_s18  ;;  %s2371_s4 = scalar_lea.sflag [#allocation9], %s151_s21 }
  0x43   : > { %s162_s30 = sshll.u32 %s155_s26, 4  ;;  %s2126_s5 = scalar_lea.hbm %s2367_s29, 2048  ;;  %s2369_s30 = int_to_ptr.vmem [resolvable:$true] %s162_s30 }
  0x44   : > { %p2127_p12 = scmp.ne.s32.totalorder %s2367_s29, %s2126_s5  ;;  %p2863_p2 = scmp.ne.s32.totalorder %s2862_s27, 0 }
  0x45   : > { %s2131_s6 = scalar_lea.hbm %s2851_s1, 6144  ;;  %p2132_p10 = scmp.lt.u32.totalorder %s2367_s29, %s2851_s1 }
  0x46   : > { %p2128_p5 = pneg %p2863_p2  ;;  %p2133_p0 = scmp.lt.u32.totalorder %s2131_s6, %s2126_s5 }
  0x47   : > { %p2135_p3 = scmp.lt.u32.totalorder %s2126_s5, %s2367_s29 }
  0x48   : > { %p2129_p8 = pnand %p2128_p5, %p2127_p12  ;;  %p2134_p1 = por %p2133_p0, %p2132_p10 }
  0x4a   : > { %p2130_p9 = pneg %p2129_p8  ;;  %p2136_p6 = por %p2135_p3, %p2134_p1 }
  0x4c   : > { %p2137_p4 = pnand %p2136_p6, %p2130_p9 }
  0x4e   : > { %2140 = shalt.err (!%p2137_p4)
}
  0x4f   : > { %s2141_s21 = scalar_lea.vmem %s2369_s30, 2048  ;;  %s2220_s8 = smov [#allocation8]  }
  0x50   : > { %p2142_p7 = scmp.ne.s32.totalorder %s2369_s30, %s2141_s21  ;;  %s2146_s11 = sshll.u32 %s2220_s8, 4  ;;  %s2147_s11 = int_to_ptr.vmem [resolvable:$false] %s2146_s11 }
  0x51   : > { %s2148_s12 = scalar_lea.vmem %s2147_s11, 4096  ;;  %p2149_p12 = scmp.lt.s32.totalorder %s2369_s30, %s2147_s11 }
  0x52   : > { %p2144_p11 = pnand %p2142_p7, %p2128_p5  ;;  %p2150_p8 = scmp.lt.s32.totalorder %s2148_s12, %s2141_s21 }
  0x54   : > { %p2145_p13 = pneg %p2144_p11  ;;  %p2151_p10 = por %p2150_p8, %p2149_p12 }
  0x56   : > { %p2152_p0 = pnand %p2151_p10, %p2145_p13 }
  0x58   : > { %2155 = shalt.err (!%p2152_p0)
}
  0x59   : > { %1855 = dma.hbm_to_vmem [thread:$0]  (!%p2863_p2), %s2367_s29, 2048, %s2369_s30, %s2371_s4, %s2217_s9, %s2217_s9, %s2218_s10  }
  0x5a   : > { %p2864_p5 = scmp.ne.s32.totalorder %s2860_s23, 0 }
  0x5b   : > { %p2865_p9 = scmp.eq.s32.totalorder (!%p2864_p5), %s2265_s16, 0 }
  0x5c   : > { %174 = sbr.rel (%p2864_p5) target bundleno = 1354 (0x54a), region = 32 }
  0x63   : > { %2185 = dma.done.wait (%p2865_p9), [#allocation6], 2048   ;;  %p2866_p1 = pmov %p2865_p9 }
  0x64   : > { %s180_s27 = sand.u32 1, %s2265_s16   ;;  %s182_s18 = sand.u32 1, %s2206_s13  }
  0x65   : > { %2187 = vsyncadd (%p2866_p1), [#allocation6], 4294965248  ;;  %s1580_s24 = sshll.u32 %s182_s18, 7  ;;  %s181_s28 = scalar_lea.sflag [#allocation9], %s180_s27 }
  0x66   : > { %s2410_s26 = scalar_lea.vmem [#allocation8], %s1580_s24  ;;  %p2867_p3 = scmp.ne.s32.totalorder %s2859_s22, 0 }
  0x68   : > { %2189 = dma.done.wait (%p2867_p3), %s181_s28, 2048  }
  0x69   : > { %2191 = vsyncadd (%p2867_p3), %s181_s28, 4294965248  ;;  %p2868_p2 = pmov %p2866_p1 }
  0x6a   : > { %p2869_p6 = pmov %p2866_p1 }
  0x6b   : > { %2193 = dma.done.wait (%p2868_p2), [#allocation9], 2048  }
  0x6c   : > { %2195 = vsyncadd (%p2869_p6), [#allocation9], 4294965248  ;;  %p2870_p4 = scmp.ne.s32.totalorder %s2265_s16, 0 }
  0x6d   : > { %vm211_vm0 = vcmask (!%p2870_p4), 7168   ;;  %v2221_v0 = vmov (!%p2870_p4), -inf   ;;  %v2222_v1 = vmov (!%p2870_p4), 0.0  }
  0x6e   : > { %210 = sbr.rel (%p2870_p4) target bundleno = 134 (0x86), region = 48  ;;  %212 = vst.msk [vmem:[#allocation2] sm:$0xff] (!%p2870_p4), %vm211_vm0, %v2221_v0  ;;  %213 = vst.msk [vmem:[#allocation2 + $0x8] sm:$0xff] (!%p2870_p4), %vm211_vm0, %v2221_v0 }
  0x6f   : > { %214 = vst.msk [vmem:[#allocation2 + $0x10] sm:$0xff] (!%p2870_p4), %vm211_vm0, %v2221_v0  ;;  %215 = vst.msk [vmem:[#allocation2 + $0x18] sm:$0xff] (!%p2870_p4), %vm211_vm0, %v2221_v0 }
  0x70   : > { %216 = vst.msk [vmem:[#allocation2 + $0x20] sm:$0xff] (!%p2870_p4), %vm211_vm0, %v2221_v0  ;;  %217 = vst.msk [vmem:[#allocation2 + $0x28] sm:$0xff] (!%p2870_p4), %vm211_vm0, %v2221_v0 }
  0x71   : > { %218 = vst.msk [vmem:[#allocation2 + $0x30] sm:$0xff] (!%p2870_p4), %vm211_vm0, %v2221_v0  ;;  %219 = vst.msk [vmem:[#allocation2 + $0x38] sm:$0xff] (!%p2870_p4), %vm211_vm0, %v2221_v0 }
  0x72   : > { %220 = vst.msk [vmem:[#allocation2 + $0x40] sm:$0xff] (!%p2870_p4), %vm211_vm0, %v2221_v0  ;;  %221 = vst.msk [vmem:[#allocation2 + $0x48] sm:$0xff] (!%p2870_p4), %vm211_vm0, %v2221_v0 }
  0x73   : > { %222 = vst.msk [vmem:[#allocation2 + $0x50] sm:$0xff] (!%p2870_p4), %vm211_vm0, %v2221_v0  ;;  %223 = vst.msk [vmem:[#allocation2 + $0x58] sm:$0xff] (!%p2870_p4), %vm211_vm0, %v2221_v0 }
  0x74   : > { %224 = vst.msk [vmem:[#allocation2 + $0x60] sm:$0xff] (!%p2870_p4), %vm211_vm0, %v2221_v0  ;;  %225 = vst.msk [vmem:[#allocation2 + $0x68] sm:$0xff] (!%p2870_p4), %vm211_vm0, %v2221_v0 }
  0x75   : > { %226 = vst.msk [vmem:[#allocation2 + $0x70] sm:$0xff] %vm211_vm0, %v2221_v0  ;;  %227 = vst.msk [vmem:[#allocation2 + $0x78] sm:$0xff] %vm211_vm0, %v2221_v0 }
  0x76   : > { %228 = vst.msk [vmem:[#allocation3] sm:$0xff] %vm211_vm0, %v2222_v1  ;;  %229 = vst.msk [vmem:[#allocation3 + $0x8] sm:$0xff] %vm211_vm0, %v2222_v1 }
  0x77   : > { %230 = vst.msk [vmem:[#allocation3 + $0x10] sm:$0xff] %vm211_vm0, %v2222_v1  ;;  %231 = vst.msk [vmem:[#allocation3 + $0x18] sm:$0xff] %vm211_vm0, %v2222_v1 }
  0x78   : > { %232 = vst.msk [vmem:[#allocation3 + $0x20] sm:$0xff] %vm211_vm0, %v2222_v1  ;;  %233 = vst.msk [vmem:[#allocation3 + $0x28] sm:$0xff] %vm211_vm0, %v2222_v1 }
  0x79   : > { %234 = vst.msk [vmem:[#allocation3 + $0x30] sm:$0xff] %vm211_vm0, %v2222_v1  ;;  %235 = vst.msk [vmem:[#allocation3 + $0x38] sm:$0xff] %vm211_vm0, %v2222_v1 }
  0x7a   : > { %236 = vst.msk [vmem:[#allocation3 + $0x40] sm:$0xff] %vm211_vm0, %v2222_v1  ;;  %237 = vst.msk [vmem:[#allocation3 + $0x48] sm:$0xff] %vm211_vm0, %v2222_v1 }
  0x7b   : > { %238 = vst.msk [vmem:[#allocation3 + $0x50] sm:$0xff] %vm211_vm0, %v2222_v1  ;;  %239 = vst.msk [vmem:[#allocation3 + $0x58] sm:$0xff] %vm211_vm0, %v2222_v1 }
  0x7c   : > { %240 = vst.msk [vmem:[#allocation3 + $0x60] sm:$0xff] %vm211_vm0, %v2222_v1  ;;  %241 = vst.msk [vmem:[#allocation3 + $0x68] sm:$0xff] %vm211_vm0, %v2222_v1 }
  0x7d   : > { %242 = vst.msk [vmem:[#allocation3 + $0x70] sm:$0xff] %vm211_vm0, %v2222_v1  ;;  %243 = vst.msk [vmem:[#allocation3 + $0x78] sm:$0xff] %vm211_vm0, %v2222_v1 }
  0x7e   : > { %244 = vst [vmem:[#allocation4] sm:$0xff] %v2222_v1  ;;  %245 = vst [vmem:[#allocation4 + $0x8] sm:$0xff] %v2222_v1 }
  0x7f   : > { %246 = vst [vmem:[#allocation4 + $0x10] sm:$0xff] %v2222_v1  ;;  %247 = vst [vmem:[#allocation4 + $0x18] sm:$0xff] %v2222_v1 }
  0x80   : > { %248 = vst [vmem:[#allocation4 + $0x20] sm:$0xff] %v2222_v1  ;;  %249 = vst [vmem:[#allocation4 + $0x28] sm:$0xff] %v2222_v1 }
  0x81   : > { %250 = vst [vmem:[#allocation4 + $0x30] sm:$0xff] %v2222_v1  ;;  %251 = vst [vmem:[#allocation4 + $0x38] sm:$0xff] %v2222_v1 }
  0x82   : > { %252 = vst [vmem:[#allocation4 + $0x40] sm:$0xff] %v2222_v1  ;;  %253 = vst [vmem:[#allocation4 + $0x48] sm:$0xff] %v2222_v1 }
  0x83   : > { %254 = vst [vmem:[#allocation4 + $0x50] sm:$0xff] %v2222_v1  ;;  %255 = vst [vmem:[#allocation4 + $0x58] sm:$0xff] %v2222_v1 }
  0x84   : > { %256 = vst [vmem:[#allocation4 + $0x60] sm:$0xff] %v2222_v1  ;;  %257 = vst [vmem:[#allocation4 + $0x68] sm:$0xff] %v2222_v1 }
  0x85   : > { %258 = vst [vmem:[#allocation4 + $0x70] sm:$0xff] %v2222_v1  ;;  %259 = vst [vmem:[#allocation4 + $0x78] sm:$0xff] %v2222_v1 }
  0x86 PF: > { %v276_v2 = vld [vmem:[%s2410_s26] sm:$0xff]  ;;  %v277_v3 = vld [vmem:[%s2410_s26 + $0x8] sm:$0xff]  ;;  %v278_v4 = vld [vmem:[%s2410_s26 + $0x10] sm:$0xff]  ;;  %v2223_v62 = vmov 0   ;;  %vm867_vm1 = vcmask 7168   ;;  %p1583_p7 = scmp.ne.s32.totalorder %s2265_s16, 2 }
  0x87   : > { %v1765_v5 = vpack.c.bf16 %v277_v3, %v276_v2  ;;  %v279_v6 = vld [vmem:[%s2410_s26 + $0x18] sm:$0xff]  ;;  %v260_v8 = vld [vmem:[#allocation5] sm:$0xff]  ;;  %v281_v10 = vld [vmem:[%s2410_s26 + $0x28] sm:$0xff]  ;;  %1904 = vset.pattern.permute.xlu0 %v2223_v62  ;;  %1905 = vset.pattern.permute.xlu1 %v2223_v62 }
  0x88   : > { %v1769_v7 = vpack.c.bf16 %v279_v6, %v278_v4  ;;  %v280_v9 = vld [vmem:[%s2410_s26 + $0x20] sm:$0xff]  ;;  %1685 = vmatprep.mubr.f32.mxu0 %v260_v8  ;;  %v282_v12 = vld [vmem:[%s2410_s26 + $0x30] sm:$0xff]  ;;  %v283_v13 = vld [vmem:[%s2410_s26 + $0x38] sm:$0xff] }
  0x89   : > { %1766 = vmatprep.subr.bf16.mxu0 %v1765_v5  ;;  %v1773_v11 = vpack.c.bf16 %v281_v10, %v280_v9  ;;  %v1777_v14 = vpack.c.bf16 %v283_v13, %v282_v12  ;;  %v284_v15 = vld [vmem:[%s2410_s26 + $0x40] sm:$0xff]  ;;  %v285_v16 = vld [vmem:[%s2410_s26 + $0x48] sm:$0xff]  ;;  %v286_v18 = vld [vmem:[%s2410_s26 + $0x50] sm:$0xff] }
  0x8a   : > { %1768 = vmatpush3.bf16.xpose.msra.mxu0 %v1765_v5  ;;  %v1781_v17 = vpack.c.bf16 %v285_v16, %v284_v15  ;;  %v287_v19 = vld [vmem:[%s2410_s26 + $0x58] sm:$0xff]  ;;  %v288_v21 = vld [vmem:[%s2410_s26 + $0x60] sm:$0xff]  ;;  %v289_v22 = vld [vmem:[%s2410_s26 + $0x68] sm:$0xff] }
  0x8b   : > { %1770 = vmatprep.subr.bf16.mxu0 %v1769_v7  ;;  %v1785_v20 = vpack.c.bf16 %v287_v19, %v286_v18  ;;  %v1789_v23 = vpack.c.bf16 %v289_v22, %v288_v21  ;;  %v290_v24 = vld [vmem:[%s2410_s26 + $0x70] sm:$0xff]  ;;  %v291_v25 = vld [vmem:[%s2410_s26 + $0x78] sm:$0xff]  ;;  %v261_v27 = vld [vmem:[#allocation5 + $0x8] sm:$0xff] }
  0x8c   : > { %v1793_v26 = vpack.c.bf16 %v291_v25, %v290_v24  ;;  %v262_v28 = vld [vmem:[#allocation5 + $0x10] sm:$0xff]  ;;  %v263_v29 = vld [vmem:[#allocation5 + $0x18] sm:$0xff]  ;;  %v264_v30 = vld [vmem:[#allocation5 + $0x20] sm:$0xff] }
  0x8d   : > { %v265_v31 = vld [vmem:[#allocation5 + $0x28] sm:$0xff]  ;;  %v266_v32 = vld [vmem:[#allocation5 + $0x30] sm:$0xff]  ;;  %v267_v33 = vld [vmem:[#allocation5 + $0x38] sm:$0xff] }
  0x8e   : > { %v268_v34 = vld [vmem:[#allocation5 + $0x40] sm:$0xff]  ;;  %v269_v35 = vld [vmem:[#allocation5 + $0x48] sm:$0xff]  ;;  %v270_v36 = vld [vmem:[#allocation5 + $0x50] sm:$0xff] }
  0x8f   : > { %v271_v37 = vld [vmem:[#allocation5 + $0x58] sm:$0xff]  ;;  %v272_v38 = vld [vmem:[#allocation5 + $0x60] sm:$0xff]  ;;  %v273_v39 = vld [vmem:[#allocation5 + $0x68] sm:$0xff] }
  0x90   : > { %v274_v40 = vld [vmem:[#allocation5 + $0x70] sm:$0xff]  ;;  %v275_v41 = vld [vmem:[#allocation5 + $0x78] sm:$0xff] }
  0x92   : > { %1772 = vmatpush3.bf16.xpose.msra.mxu0 %v1769_v7 }
  0x93   : > { %1774 = vmatprep.subr.bf16.mxu0 %v1773_v11 }
  0x9a   : > { %1776 = vmatpush3.bf16.xpose.msra.mxu0 %v1773_v11 }
  0x9b   : > { %1778 = vmatprep.subr.bf16.mxu0 %v1777_v14 }
  0xa2   : > { %1780 = vmatpush3.bf16.xpose.msra.mxu0 %v1777_v14 }
  0xa3   : > { %1782 = vmatprep.subr.bf16.mxu0 %v1781_v17 }
  0xaa   : > { %1784 = vmatpush3.bf16.xpose.msra.mxu0 %v1781_v17 }
  0xab   : > { %1786 = vmatprep.subr.bf16.mxu0 %v1785_v20 }
  0xb2   : > { %1788 = vmatpush3.bf16.xpose.msra.mxu0 %v1785_v20 }
  0xb3   : > { %1790 = vmatprep.subr.bf16.mxu0 %v1789_v23 }
  0xba   : > { %1792 = vmatpush3.bf16.xpose.msra.mxu0 %v1789_v23 }
  0xbb   : > { %1794 = vmatprep.subr.bf16.mxu0 %v1793_v26 }
  0xc2   : > { %1796 = vmatpush3.bf16.xpose.msra.mxu0 %v1793_v26 }
  0xc9   : > { %1686 = vmatmul.mubr.f32.vlgmr.msra.gmra.mrb[0].mxu0 %v261_v27 }
  0xca   : > { %1688 = vmatprep.mubr.f32.mxu0 %v262_v28 }
  0xcd   : > { %1689 = vmatmul.mubr.f32.gmra.mrb[2].mxu0 %v263_v29 }
  0xce   : > { %1691 = vmatprep.mubr.f32.mxu0 %v264_v30 }
  0xd1   : > { %1692 = vmatmul.mubr.f32.gmra.mrb[4].mxu0 %v265_v31 }
  0xd2   : > { %1694 = vmatprep.mubr.f32.mxu0 %v266_v32 }
  0xd5   : > { %1695 = vmatmul.mubr.f32.gmra.mrb[6].mxu0 %v267_v33 }
  0xd6   : > { %1697 = vmatprep.mubr.f32.mxu0 %v268_v34 }
  0xd9   : > { %1698 = vmatmul.mubr.f32.gmra.mrb[8].mxu0 %v269_v35 }
  0xda   : > { %1700 = vmatprep.mubr.f32.mxu0 %v270_v36 }
  0xdd   : > { %1701 = vmatmul.mubr.f32.gmra.mrb[10].mxu0 %v271_v37 }
  0xde   : > { %1703 = vmatprep.mubr.f32.mxu0 %v272_v38 }
  0xe1   : > { %1704 = vmatmul.mubr.f32.gmra.mrb[12].mxu0 %v273_v39 }
  0xe2   : > { %1706 = vmatprep.mubr.f32.mxu0 %v274_v40 }
  0xe5   : > { %1707 = vmatmul.mubr.f32.gmra.mrb[14].mxu0 %v275_v41 }
 0x19c   : > { %v2470_v42 = vpop.f32.mrb[0].mxu0 }
 0x19d   : > { %v2472_v43 = vpop.f32.mrb[1].mxu0 }
 0x19e   : > { %563 = vmax.xlane.f32.xlu0 %v2472_v43 }
 0x1a0   : > { %v2475_v44 = vpop.f32.mrb[2].mxu0 }
 0x1a1   : > { %569 = vmax.xlane.f32.xlu1 %v2475_v44  ;;  %v2478_v45 = vpop.f32.mrb[3].mxu0 }
 0x1a2   : > { %565 = vmax.xlane.f32.xlu0 %v2470_v42 }
 0x1a4   : > { %v2481_v46 = vpop.f32.mrb[4].mxu0 }
 0x1a5   : > { %v438_v47 = vmax.f32 %v2470_v42, %v2481_v46  ;;  %567 = vmax.xlane.f32.xlu1 %v2478_v45  ;;  %v2486_v48 = vpop.f32.mrb[5].mxu0 }
 0x1a6   : > { %v437_v49 = vmax.f32 %v2472_v43, %v2486_v48  ;;  %571 = vmax.xlane.f32.xlu0 %v2486_v48 }
 0x1a8   : > { %v2491_v50 = vpop.f32.mrb[6].mxu0 }
 0x1a9   : > { %v440_v51 = vmax.f32 %v2475_v44, %v2491_v50  ;;  %573 = vmax.xlane.f32.xlu1 %v2481_v46  ;;  %v2496_v52 = vpop.f32.mrb[7].mxu0 }
 0x1aa   : > { %v439_v53 = vmax.f32 %v2478_v45, %v2496_v52  ;;  %575 = vmax.xlane.f32.xlu0 %v2496_v52 }
 0x1ac   : > { %v2501_v54 = vpop.f32.mrb[8].mxu0 }
 0x1ad   : > { %v442_v55 = vmax.f32 %v438_v47, %v2501_v54  ;;  %577 = vmax.xlane.f32.xlu1 %v2491_v50  ;;  %v2505_v56 = vpop.f32.mrb[9].mxu0 }
 0x1ae   : > { %v441_v57 = vmax.f32 %v437_v49, %v2505_v56  ;;  %579 = vmax.xlane.f32.xlu0 %v2505_v56 }
 0x1b0   : > { %v2509_v58 = vpop.f32.mrb[10].mxu0 }
 0x1b1   : > { %v444_v59 = vmax.f32 %v440_v51, %v2509_v58  ;;  %581 = vmax.xlane.f32.xlu1 %v2501_v54  ;;  %v2513_v60 = vpop.f32.mrb[11].mxu0 }
 0x1b2   : > { %v443_v61 = vmax.f32 %v439_v53, %v2513_v60  ;;  %583 = vmax.xlane.f32.xlu0 %v2513_v60 }
 0x1b4   : > { %v2517_v63 = vpop.f32.mrb[12].mxu0 }
 0x1b5   : > { %v446_v0 = vmax.f32 %v442_v55, %v2517_v63  ;;  %585 = vmax.xlane.f32.xlu1 %v2509_v58  ;;  %v2521_v1 = vpop.f32.mrb[13].mxu0 }
 0x1b6   : > { %v445_v2 = vmax.f32 %v441_v57, %v2521_v1  ;;  %587 = vmax.xlane.f32.xlu0 %v2521_v1 }
 0x1b8   : > { %v449_v3 = vmax.f32 %v445_v2, %v446_v0  ;;  %v2525_v4 = vpop.f32.mrb[14].mxu0 }
 0x1b9   : > { %v448_v5 = vmax.f32 %v444_v59, %v2525_v4  ;;  %589 = vmax.xlane.f32.xlu1 %v2517_v63  ;;  %v2529_v6 = vpop.f32.mrb[15].mxu0 }
 0x1ba   : > { %v447_v7 = vmax.f32 %v443_v61, %v2529_v6  ;;  %591 = vmax.xlane.f32.xlu0 %v2529_v6 }
 0x1bc   : > { %v450_v8 = vmax.f32 %v447_v7, %v448_v5 }
 0x1bd   : > { %593 = vmax.xlane.f32.xlu1 %v2525_v4 }
 0x1be   : > { %v451_v9 = vmax.f32 %v449_v3, %v450_v8 }
 0x1c0   : > { %v452_v10 = vrot.slane %v451_v9, 4 }
 0x1c2   : > { %v453_v11 = vmax.f32 %v451_v9, %v452_v10 }
 0x1c4   : > { %v454_v12 = vrot.slane %v453_v11, 2 }
 0x1c6   : > { %v455_v13 = vmax.f32 %v453_v11, %v454_v12 }
 0x1c8   : > { %v456_v14 = vrot.slane %v455_v13, 1 }
 0x1ca   : > { %v457_v15 = vmax.f32 %v455_v13, %v456_v14 }
 0x1cc   : > { %v472_v16 = vsub.f32 %v2529_v6, %v457_v15  ;;  %v458_v17 = vsub.f32 %v2472_v43, %v457_v15  ;;  %v459_v18 = vsub.f32 %v2470_v42, %v457_v15  ;;  %v460_v19 = vsub.f32 %v2478_v45, %v457_v15 }
 0x1cd   : > { %v461_v20 = vsub.f32 %v2475_v44, %v457_v15  ;;  %v462_v21 = vsub.f32 %v2486_v48, %v457_v15  ;;  %v463_v22 = vsub.f32 %v2481_v46, %v457_v15  ;;  %v464_v23 = vsub.f32 %v2496_v52, %v457_v15 }
 0x1ce   : > { %v465_v24 = vsub.f32 %v2491_v50, %v457_v15  ;;  %v466_v25 = vsub.f32 %v2505_v56, %v457_v15  ;;  %v467_v26 = vsub.f32 %v2501_v54, %v457_v15  ;;  %v468_v27 = vsub.f32 %v2513_v60, %v457_v15 }
 0x1cf   : > { %v469_v28 = vsub.f32 %v2509_v58, %v457_v15  ;;  %v470_v29 = vsub.f32 %v2521_v1, %v457_v15  ;;  %v471_v30 = vsub.f32 %v2517_v63, %v457_v15  ;;  %v473_v31 = vsub.f32 %v2525_v4, %v457_v15 }
 0x1d0   : > { %v474_v32 = vmul.f32 1.442695, %v458_v17  ;;  %v476_v33 = vmul.f32 1.442695, %v459_v18  ;;  %v478_v34 = vmul.f32 1.442695, %v460_v19 }
 0x1d1   : > { %v480_v35 = vmul.f32 1.442695, %v461_v20  ;;  %v482_v36 = vmul.f32 1.442695, %v462_v21  ;;  %v484_v37 = vmul.f32 1.442695, %v463_v22 }
 0x1d2   : > { %1906 = vpow2.f32 %v474_v32  ;;  %v486_v38 = vmul.f32 1.442695, %v464_v23  ;;  %v488_v39 = vmul.f32 1.442695, %v465_v24  ;;  %v490_v47 = vmul.f32 1.442695, %v466_v25 }
 0x1d3   : > { %1908 = vpow2.f32 %v476_v33  ;;  %v492_v53 = vmul.f32 1.442695, %v467_v26  ;;  %v494_v59 = vmul.f32 1.442695, %v468_v27  ;;  %v496_v0 = vmul.f32 1.442695, %v469_v28 }
 0x1d4   : > { %1910 = vpow2.f32 %v478_v34  ;;  %v498_v5 = vmul.f32 1.442695, %v470_v29  ;;  %v500_v9 = vmul.f32 1.442695, %v471_v30  ;;  %v502_v12 = vmul.f32 1.442695, %v472_v16 }
 0x1d5   : > { %1912 = vpow2.f32 %v480_v35  ;;  %v504_v15 = vmul.f32 1.442695, %v473_v31 }
 0x1d6   : > { %1914 = vpow2.f32 %v482_v36 }
 0x1d7   : > { %1916 = vpow2.f32 %v484_v37 }
 0x1d8   : > { %1918 = vpow2.f32 %v486_v38 }
 0x1d9   : > { %1920 = vpow2.f32 %v488_v39 }
 0x1da   : > { %1922 = vpow2.f32 %v490_v47 }
 0x1db   : > { %1924 = vpow2.f32 %v492_v53 }
 0x1dc   : > { %v1907_v40 = vpop.eup %1906  ;;  %1926 = vpow2.f32 %v494_v59 }
 0x1dd   : > { %v1909_v41 = vpop.eup %1908  ;;  %1928 = vpow2.f32 %v496_v0 }
 0x1de   : > { %v506_v49 = vadd.f32 %v1909_v41, %v1907_v40  ;;  %v1911_v51 = vpop.eup %1910  ;;  %1930 = vpow2.f32 %v498_v5 }
 0x1df   : > { %v1913_v57 = vpop.eup %1912  ;;  %1932 = vpow2.f32 %v500_v9 }
 0x1e0   : > { %v507_v55 = vadd.f32 %v1911_v51, %v506_v49  ;;  %v1915_v62 = vpop.eup %1914  ;;  %1934 = vpow2.f32 %v502_v12 }
 0x1e1   : > { %v1917_v3 = vpop.eup %1916  ;;  %1936 = vpow2.f32 %v504_v15 }
 0x1e2   : > { %v508_v61 = vadd.f32 %v1913_v57, %v507_v55  ;;  %v1919_v8 = vpop.eup %1918 }
 0x1e3   : > { %v1921_v11 = vpop.eup %1920 }
 0x1e4   : > { %v509_v2 = vadd.f32 %v1915_v62, %v508_v61  ;;  %v1923_v14 = vpop.eup %1922 }
 0x1e5   : > { %v1925_v18 = vpop.eup %1924 }
 0x1e6   : > { %v510_v7 = vadd.f32 %v1917_v3, %v509_v2  ;;  %v1927_v20 = vpop.eup %1926 }
 0x1e7   : > { %v1929_v22 = vpop.eup %1928 }
 0x1e8   : > { %v511_v10 = vadd.f32 %v1919_v8, %v510_v7  ;;  %v1931_v24 = vpop.eup %1930 }
 0x1e9   : > { %v1933_v26 = vpop.eup %1932 }
 0x1ea   : > { %v512_v13 = vadd.f32 %v1921_v11, %v511_v10  ;;  %v1935_v28 = vpop.eup %1934 }
 0x1eb   : > { %v1937_v29 = vpop.eup %1936 }
 0x1ec   : > { %v513_v17 = vadd.f32 %v1923_v14, %v512_v13 }
 0x1ee   : > { %v514_v19 = vadd.f32 %v1925_v18, %v513_v17 }
 0x1f0   : > { %v515_v21 = vadd.f32 %v1927_v20, %v514_v19 }
 0x1f2   : > { %v516_v23 = vadd.f32 %v1929_v22, %v515_v21 }
 0x1f4   : > { %v517_v25 = vadd.f32 %v1931_v24, %v516_v23 }
 0x1f6   : > { %v518_v27 = vadd.f32 %v1933_v26, %v517_v25 }
 0x1f8   : > { %v519_v16 = vadd.f32 %v1935_v28, %v518_v27  ;;  %v2565_v27 = vld [vmem:[#allocation2 + $0x10] sm:$0xff] }
 0x1fa   : > { %v520_v30 = vadd.f32 %v1937_v29, %v519_v16 }
 0x1fc   : > { %v521_v32 = vrot.slane %v520_v30, 4 }
 0x1fe   : > { %v522_v33 = vadd.f32 %v521_v32, %v520_v30  ;;  %v2576_v32 = vld [vmem:[#allocation2 + $0x28] sm:$0xff] }
 0x200   : > { %v523_v31 = vrot.slane %v522_v33, 2 }
 0x202   : > { %v524_v34 = vadd.f32 %v523_v31, %v522_v33  ;;  %v2583_v31 = vld [vmem:[#allocation2 + $0x30] sm:$0xff] }
 0x204   : > { %v525_v35 = vrot.slane %v524_v34, 1 }
 0x206   : > { %v526_v36 = vadd.f32 %v525_v35, %v524_v34 }
 0x208   : > { %1938 = vrcp.f32 %v526_v36 }
 0x212   : > { %v1939_v37 = vpop.eup %1938 }
 0x213   : > { %v528_v38 = vmul.f32 %v1939_v37, %v526_v36 }
 0x215   : > { %v529_v39 = vsub.f32 2.0, %v528_v38 }
 0x217   : > { %v530_v47 = vmul.f32 %v1939_v37, %v529_v39  ;;  %v2588_v37 = vld [vmem:[#allocation2 + $0x38] sm:$0xff]  ;;  %v2594_v39 = vld [vmem:[#allocation2 + $0x40] sm:$0xff] }
 0x219   : > { %v531_v49 = vmul.f32 %v1907_v40, %v530_v47  ;;  %v532_v53 = vmul.f32 %v1909_v41, %v530_v47  ;;  %v533_v55 = vmul.f32 %v1911_v51, %v530_v47  ;;  %v534_v59 = vmul.f32 %v1913_v57, %v530_v47 }
 0x21a   : > { %v535_v61 = vmul.f32 %v1915_v62, %v530_v47  ;;  %v536_v0 = vmul.f32 %v1917_v3, %v530_v47  ;;  %v537_v2 = vmul.f32 %v1919_v8, %v530_v47  ;;  %v538_v5 = vmul.f32 %v1921_v11, %v530_v47  ;;  %v547_v3 = vld [vmem:[#allocation2] sm:$0xff] }
 0x21b   : > { %v1797_v7 = vpack.c.bf16 %v532_v53, %v531_v49  ;;  %v1801_v9 = vpack.c.bf16 %v534_v59, %v533_v55  ;;  %v539_v10 = vmul.f32 %v1923_v14, %v530_v47  ;;  %v540_v12 = vmul.f32 %v1925_v18, %v530_v47  ;;  %v2556_v14 = vld [vmem:[#allocation2 + $0x18] sm:$0xff]  ;;  %v2558_v18 = vld [vmem:[#allocation2 + $0x8] sm:$0xff] }
 0x21c   : > { %v1805_v13 = vpack.c.bf16 %v536_v0, %v535_v61  ;;  %v1809_v15 = vpack.c.bf16 %v538_v5, %v537_v2  ;;  %v541_v17 = vmul.f32 %v1927_v20, %v530_v47  ;;  %v542_v19 = vmul.f32 %v1929_v22, %v530_v47  ;;  %v2600_v55 = vld [vmem:[#allocation2 + $0x48] sm:$0xff]  ;;  %v2606_v61 = vld [vmem:[#allocation2 + $0x50] sm:$0xff] }
 0x21d   : > { %1798 = vmatprep.subr.bf16.mxu1 %v1797_v7  ;;  %v1813_v21 = vpack.c.bf16 %v540_v12, %v539_v10  ;;  %v543_v23 = vmul.f32 %v1931_v24, %v530_v47  ;;  %v544_v25 = vmul.f32 %v1933_v26, %v530_v47  ;;  %v545_v40 = vmul.f32 %v1935_v28, %v530_v47  ;;  %v2568_v28 = vld [vmem:[#allocation2 + $0x20] sm:$0xff] }
 0x21e   : > { %1800 = vmatpush3.bf16.xpose.msra.mxu1 %v1797_v7  ;;  %v2550_v41 = vpack.c.bf16 %v542_v19, %v541_v17  ;;  %v546_v51 = vmul.f32 %v1937_v29, %v530_v47  ;;  %v2618_v12 = vld [vmem:[#allocation2 + $0x60] sm:$0xff] }
 0x21f   : > { %1802 = vmatprep.subr.bf16.mxu1 %v1801_v9  ;;  %v2552_v57 = vpack.c.bf16 %v544_v25, %v543_v23  ;;  %v560_v23 = vld [vmem:[#allocation2 + $0x68] sm:$0xff] }
 0x220   : > { %v2554_v62 = vpack.c.bf16 %v546_v51, %v545_v40  ;;  %v2629_v40 = vld [vmem:[#allocation2 + $0x70] sm:$0xff] }
 0x226   : > { %1804 = vmatpush3.bf16.xpose.msra.mxu1 %v1801_v9  ;;  %v2612_v9 = vld [vmem:[#allocation2 + $0x58] sm:$0xff] }
 0x227   : > { %1806 = vmatprep.subr.bf16.mxu1 %v1805_v13 }
 0x22b   : > { %v564_v8 = vpop.xlane.xlu0 %563 }
 0x22c   : > { %v595_v11 = vmax.f32 %v547_v3, %v564_v8 }
 0x22e   : > { %1173 = vst.msk [vmem:[#allocation2] sm:$0xff] %vm867_vm1, %v595_v11  ;;  %1808 = vmatpush3.bf16.xpose.msra.mxu1 %v1805_v13  ;;  %v570_v20 = vpop.xlane.xlu1 %569  ;;  %661 = vperm.xlu0 %1904, %v595_v11   ;;  %v611_v0 = vsub.f32 %v547_v3, %v595_v11 }
 0x22f   : > { %1810 = vmatprep.subr.bf16.mxu1 %v1809_v15  ;;  %v598_v22 = vmax.f32 %v2556_v14, %v570_v20  ;;  %v566_v24 = vpop.xlane.xlu0 %565  ;;  %v2636_v20 = vld [vmem:[#allocation2 + $0x78] sm:$0xff] }
 0x230   : > { %v2563_v26 = vmax.f32 %v2558_v18, %v566_v24  ;;  %v627_v13 = vmul.f32 1.442695, %v611_v0 }
 0x231   : > { %1176 = vst.msk [vmem:[#allocation2 + $0x18] sm:$0xff] %vm867_vm1, %v598_v22 }
 0x232   : > { %1174 = vst.msk [vmem:[#allocation2 + $0x8] sm:$0xff] %vm867_vm1, %v2563_v26  ;;  %v568_v16 = vpop.xlane.xlu1 %567  ;;  %666 = vperm.xlu1 %1905, %v2563_v26   ;;  %1940 = vpow2.f32 %v627_v13 }
 0x233   : > { %v2574_v29 = vmax.f32 %v2565_v27, %v568_v16  ;;  %v572_v30 = vpop.xlane.xlu0 %571 }
 0x234   : > { %v2579_v33 = vmax.f32 %v2568_v28, %v572_v30 }
 0x235   : > { %1175 = vst.msk [vmem:[#allocation2 + $0x10] sm:$0xff] %vm867_vm1, %v2574_v29 }
 0x236   : > { %1812 = vmatpush3.bf16.xpose.msra.mxu1 %v1809_v15  ;;  %v574_v34 = vpop.xlane.xlu1 %573  ;;  %676 = vperm.xlu1 %1905, %v598_v22   ;;  %1177 = vst.msk [vmem:[#allocation2 + $0x20] sm:$0xff] %vm867_vm1, %v2579_v33  ;;  %v614_v15 = vsub.f32 %v2556_v14, %v598_v22 }
 0x237   : > { %1814 = vmatprep.subr.bf16.mxu1 %v1813_v21  ;;  %v600_v35 = vmax.f32 %v2576_v32, %v574_v34  ;;  %v576_v36 = vpop.xlane.xlu0 %575 }
 0x238   : > { %v2591_v38 = vmax.f32 %v2583_v31, %v576_v36  ;;  %v633_v51 = vmul.f32 1.442695, %v614_v15 }
 0x239   : > { %1178 = vst.msk [vmem:[#allocation2 + $0x28] sm:$0xff] %vm867_vm1, %v600_v35  ;;  %v616_v3 = vsub.f32 %v2576_v32, %v600_v35  ;;  %v612_v32 = vsub.f32 %v2558_v18, %v2563_v26  ;;  %v613_v26 = vsub.f32 %v2565_v27, %v2574_v29 }
 0x23a   : > { %v578_v47 = vpop.xlane.xlu1 %577  ;;  %671 = vperm.xlu1 %1905, %v2574_v29   ;;  %1179 = vst.msk [vmem:[#allocation2 + $0x30] sm:$0xff] %vm867_vm1, %v2591_v38  ;;  %1942 = vpow2.f32 %v633_v51 }
 0x23b   : > { %v602_v49 = vmax.f32 %v2588_v37, %v578_v47  ;;  %v580_v53 = vpop.xlane.xlu0 %579  ;;  %v637_v24 = vmul.f32 1.442695, %v616_v3  ;;  %v629_v18 = vmul.f32 1.442695, %v612_v32 }
 0x23c   : > { %v2603_v59 = vmax.f32 %v2594_v39, %v580_v53  ;;  %v2664_v47 = vpop.eup %1940 }
 0x23d   : > { %1180 = vst.msk [vmem:[#allocation2 + $0x38] sm:$0xff] %vm867_vm1, %v602_v49  ;;  %1944 = vpow2.f32 %v637_v24 }
 0x23e   : > { %1816 = vmatpush3.bf16.xpose.msra.mxu1 %v1813_v21  ;;  %v582_v2 = vpop.xlane.xlu1 %581  ;;  %686 = vperm.xlu1 %1905, %v600_v35   ;;  %1181 = vst.msk [vmem:[#allocation2 + $0x40] sm:$0xff] %vm867_vm1, %v2603_v59 }
 0x23f   : > { %1818 = vmatprep.subr.bf16.mxu1 %v2550_v41  ;;  %v604_v5 = vmax.f32 %v2600_v55, %v582_v2  ;;  %v584_v7 = vpop.xlane.xlu0 %583 }
 0x240   : > { %v2615_v10 = vmax.f32 %v2606_v61, %v584_v7 }
 0x241   : > { %1182 = vst.msk [vmem:[#allocation2 + $0x48] sm:$0xff] %vm867_vm1, %v604_v5  ;;  %706 = vperm.xlu0 %1904, %v604_v5  }
 0x242   : > { %v586_v17 = vpop.xlane.xlu1 %585  ;;  %681 = vperm.xlu1 %1905, %v2579_v33   ;;  %1183 = vst.msk [vmem:[#allocation2 + $0x50] sm:$0xff] %vm867_vm1, %v2615_v10 }
 0x243   : > { %v606_v19 = vmax.f32 %v2612_v9, %v586_v17  ;;  %v588_v21 = vpop.xlane.xlu0 %587 }
 0x244   : > { %v2626_v25 = vmax.f32 %v2618_v12, %v588_v21  ;;  %v2671_v0 = vpop.eup %1942 }
 0x245   : > { %1184 = vst.msk [vmem:[#allocation2 + $0x58] sm:$0xff] %vm867_vm1, %v606_v19  ;;  %716 = vperm.xlu0 %1904, %v606_v19   ;;  %v622_v53 = vsub.f32 %v2612_v9, %v606_v19 }
 0x246   : > { %1820 = vmatpush3.bf16.xpose.msra.mxu1 %v2550_v41  ;;  %v590_v8 = vpop.xlane.xlu1 %589  ;;  %696 = vperm.xlu1 %1905, %v602_v49   ;;  %1185 = vst.msk [vmem:[#allocation2 + $0x60] sm:$0xff] %vm867_vm1, %v2626_v25  ;;  %v618_v41 = vsub.f32 %v2588_v37, %v602_v49  ;;  %v620_v37 = vsub.f32 %v2600_v55, %v604_v5 }
 0x247   : > { %1822 = vmatprep.subr.bf16.mxu1 %v2552_v57  ;;  %v608_v11 = vmax.f32 %v560_v23, %v590_v8  ;;  %v592_v14 = vpop.xlane.xlu0 %591  ;;  %v615_v55 = vsub.f32 %v2568_v28, %v2579_v33  ;;  %v649_v27 = vmul.f32 1.442695, %v622_v53  ;;  %v617_v5 = vsub.f32 %v2583_v31, %v2591_v38  ;;  %v2678_v7 = vpop.eup %1944 }
 0x248   : > { %v2639_v22 = vmax.f32 %v2629_v40, %v592_v14  ;;  %v641_v36 = vmul.f32 1.442695, %v618_v41  ;;  %v645_v49 = vmul.f32 1.442695, %v620_v37 }
 0x249   : > { %1186 = vst.msk [vmem:[#allocation2 + $0x68] sm:$0xff] %vm867_vm1, %v608_v11  ;;  %726 = vperm.xlu0 %1904, %v608_v11   ;;  %v624_v29 = vsub.f32 %v560_v23, %v608_v11  ;;  %v635_v2 = vmul.f32 1.442695, %v615_v55  ;;  %v639_v33 = vmul.f32 1.442695, %v617_v5 }
 0x24a   : > { %691 = vperm.xlu1 %1905, %v2591_v38   ;;  %v594_v16 = vpop.xlane.xlu1 %593  ;;  %v625_v30 = vsub.f32 %v2629_v40, %v2639_v22  ;;  %1187 = vst.msk [vmem:[#allocation2 + $0x70] sm:$0xff] %vm867_vm1, %v2639_v22  ;;  %1946 = vpow2.f32 %v641_v36  ;;  %v621_v38 = vsub.f32 %v2606_v61, %v2615_v10 }
 0x24b   : > { %v2651_v34 = vmax.f32 %v2636_v20, %v594_v16  ;;  %1948 = vpow2.f32 %v629_v18  ;;  %v653_v28 = vmul.f32 1.442695, %v624_v29 }
 0x24c   : > { %1950 = vpow2.f32 %v645_v49 }
 0x24d   : > { %v626_v35 = vsub.f32 %v2636_v20, %v2651_v34  ;;  %1188 = vst.msk [vmem:[#allocation2 + $0x78] sm:$0xff] %vm867_vm1, %v2651_v34  ;;  %736 = vperm.xlu0 %1904, %v2651_v34  }
 0x24e   : > { %1824 = vmatpush3.bf16.xpose.msra.mxu1 %v2552_v57  ;;  %701 = vperm.xlu1 %1905, %v2603_v59   ;;  %v631_v57 = vmul.f32 1.442695, %v613_v26 }
 0x24f   : > { %1826 = vmatprep.subr.bf16.mxu1 %v2554_v62 }
 0x250   : > { %1952 = vpow2.f32 %v631_v57 }
 0x251   : > { %1047 = vperm.xlu0 %1904, %v2664_v47   ;;  %1954 = vpow2.f32 %v649_v27 }
 0x252   : > { %711 = vperm.xlu1 %1905, %v2615_v10   ;;  %1956 = vpow2.f32 %v635_v2 }
 0x253   : > { %1958 = vpow2.f32 %v653_v28 }
 0x254   : > { %v2684_v9 = vpop.eup %1946  ;;  %1960 = vpow2.f32 %v639_v33 }
 0x255   : > { %1062 = vperm.xlu0 %1904, %v2671_v0   ;;  %v2686_v13 = vpop.eup %1948 }
 0x256   : > { %1828 = vmatpush3.bf16.xpose.msra.mxu1 %v2554_v62  ;;  %721 = vperm.xlu1 %1905, %v2626_v25   ;;  %v619_v62 = vsub.f32 %v2594_v39, %v2603_v59  ;;  %v2692_v15 = vpop.eup %1950  ;;  %v647_v39 = vmul.f32 1.442695, %v621_v38  ;;  %v623_v59 = vsub.f32 %v2618_v12, %v2626_v25 }
 0x258   : > { %v643_v31 = vmul.f32 1.442695, %v619_v62  ;;  %v651_v61 = vmul.f32 1.442695, %v623_v59 }
 0x259   : > { %1072 = vperm.xlu0 %1904, %v2678_v7  }
 0x25a   : > { %731 = vperm.xlu1 %1905, %v2639_v22   ;;  %v2694_v17 = vpop.eup %1952  ;;  %1962 = vpow2.f32 %v643_v31 }
 0x25b   : > { %v2700_v19 = vpop.eup %1954  ;;  %1964 = vpow2.f32 %v647_v39 }
 0x25c   : > { %v2702_v21 = vpop.eup %1956  ;;  %1966 = vpow2.f32 %v651_v61 }
 0x25d   : > { %1082 = vperm.xlu0 %1904, %v2684_v9   ;;  %v2706_v10 = vpop.eup %1958 }
 0x25e   : > { %1052 = vperm.xlu1 %1905, %v2686_v13   ;;  %v2708_v23 = vpop.eup %1960 }
 0x261   : > { %1092 = vperm.xlu0 %1904, %v2692_v15  }
 0x262   : > { %1057 = vperm.xlu1 %1905, %v2694_v17  }
 0x264   : > { %v2712_v12 = vpop.eup %1962 }
 0x265   : > { %1102 = vperm.xlu0 %1904, %v2700_v19   ;;  %v2715_v25 = vpop.eup %1964 }
 0x266   : > { %1067 = vperm.xlu1 %1905, %v2702_v21   ;;  %v2718_v51 = vpop.eup %1966 }
 0x269   : > { %1112 = vperm.xlu0 %1904, %v2706_v10  }
 0x26a   : > { %1077 = vperm.xlu1 %1905, %v2708_v23  }
 0x26e   : > { %1087 = vperm.xlu1 %1905, %v2712_v12  }
 0x272   : > { %1097 = vperm.xlu1 %1905, %v2715_v25  }
 0x276   : > { %1107 = vperm.xlu1 %1905, %v2718_v51  }
 0x2ad   : > { %v662_v3 = vpop.permute.xlu0 %661 }
 0x2ae   : > { %v739_v8 = vsub.f32 %v2472_v43, %v662_v3 }
 0x2b0   : > { %v755_v11 = vmul.f32 1.442695, %v739_v8 }
 0x2b1   : > { %v667_v14 = vpop.permute.xlu1 %666 }
 0x2b2   : > { %1968 = vpow2.f32 %v755_v11  ;;  %v740_v24 = vsub.f32 %v2470_v42, %v667_v14 }
 0x2b4   : > { %v757_v41 = vmul.f32 1.442695, %v740_v24 }
 0x2b5   : > { %v677_v16 = vpop.permute.xlu1 %676 }
 0x2b6   : > { %1970 = vpow2.f32 %v757_v41  ;;  %v742_v32 = vsub.f32 %v2475_v44, %v677_v16 }
 0x2b8   : > { %v761_v36 = vmul.f32 1.442695, %v742_v32 }
 0x2b9   : > { %v672_v37 = vpop.permute.xlu1 %671 }
 0x2ba   : > { %1972 = vpow2.f32 %v761_v36  ;;  %v741_v18 = vsub.f32 %v2478_v45, %v672_v37 }
 0x2bc   : > { %v1969_v26 = vpop.eup %1968  ;;  %v759_v49 = vmul.f32 1.442695, %v741_v18 }
 0x2bd   : > { %v687_v53 = vpop.permute.xlu1 %686  ;;  %819 = vadd.xlane.f32.xlu1 %v1969_v26  ;;  %1741 = vmatprep.mubr.f32.mxu1 %v1969_v26 }
 0x2be   : > { %1974 = vpow2.f32 %v759_v49  ;;  %v744_v43 = vsub.f32 %v2481_v46, %v687_v53 }
 0x2c0   : > { %v1971_v57 = vpop.eup %1970  ;;  %v765_v42 = vmul.f32 1.442695, %v744_v43  ;;  %v707_v55 = vpop.permute.xlu0 %706 }
 0x2c1   : > { %v682_v27 = vpop.permute.xlu1 %681  ;;  %821 = vadd.xlane.f32.xlu0 %v1971_v57  ;;  %1742 = vmatmul.mubr.f32.vlgmr.msra.gmra.mrb[0].mxu1 %v1971_v57  ;;  %v748_v5 = vsub.f32 %v2501_v54, %v707_v55 }
 0x2c2   : > { %1976 = vpow2.f32 %v765_v42  ;;  %v743_v44 = vsub.f32 %v2486_v48, %v682_v27 }
 0x2c3   : > { %v773_v38 = vmul.f32 1.442695, %v748_v5 }
 0x2c4   : > { %v1973_v29 = vpop.eup %1972  ;;  %v763_v2 = vmul.f32 1.442695, %v743_v44  ;;  %v717_v45 = vpop.permute.xlu0 %716 }
 0x2c5   : > { %v697_v28 = vpop.permute.xlu1 %696  ;;  %825 = vadd.xlane.f32.xlu1 %v1973_v29  ;;  %v750_v39 = vsub.f32 %v2509_v58, %v717_v45 }
 0x2c6   : > { %1978 = vpow2.f32 %v763_v2  ;;  %v746_v33 = vsub.f32 %v2491_v50, %v697_v28  ;;  %v657_v2 = vmul.f32 1.442695, %v626_v35 }
 0x2c7   : > { %v777_v3 = vmul.f32 1.442695, %v750_v39 }
 0x2c8   : > { %v1975_v46 = vpop.eup %1974  ;;  %v769_v62 = vmul.f32 1.442695, %v746_v33  ;;  %v727_v31 = vpop.permute.xlu0 %726 }
 0x2c9   : > { %v692_v59 = vpop.permute.xlu1 %691  ;;  %823 = vadd.xlane.f32.xlu0 %v1975_v46  ;;  %1744 = vmatprep.mubr.f32.mxu1 %v1975_v46  ;;  %v752_v8 = vsub.f32 %v2517_v63, %v727_v31 }
 0x2ca   : > { %1980 = vpow2.f32 %v769_v62  ;;  %v745_v48 = vsub.f32 %v2496_v52, %v692_v59  ;;  %1745 = vmatmul.mubr.f32.gmra.mrb[2].mxu1 %v1973_v29  ;;  %v787_v59 = vld [vmem:[#allocation3] sm:$0xff] }
 0x2cb   : > { %1982 = vpow2.f32 %v773_v38  ;;  %v781_v41 = vmul.f32 1.442695, %v752_v8 }
 0x2cc   : > { %v1977_v61 = vpop.eup %1976  ;;  %v767_v54 = vmul.f32 1.442695, %v745_v48  ;;  %v737_v11 = vpop.permute.xlu0 %736  ;;  %v803_v48 = vmul.f32 %v2664_v47, %v787_v59 }
 0x2cd   : > { %v702_v50 = vpop.permute.xlu1 %701  ;;  %829 = vadd.xlane.f32.xlu1 %v1977_v61  ;;  %v754_v16 = vsub.f32 %v2525_v4, %v737_v11 }
 0x2ce   : > { %1984 = vpow2.f32 %v767_v54  ;;  %v747_v14 = vsub.f32 %v2505_v56, %v702_v50 }
 0x2cf   : > { %1986 = vpow2.f32 %v777_v3  ;;  %v785_v37 = vmul.f32 1.442695, %v754_v16  ;;  %v788_v3 = vld [vmem:[#allocation3 + $0x8] sm:$0xff]  ;;  %v789_v16 = vld [vmem:[#allocation3 + $0x10] sm:$0xff] }
 0x2d0   : > { %v1979_v58 = vpop.eup %1978  ;;  %v771_v24 = vmul.f32 1.442695, %v747_v14  ;;  %v2751_v22 = vpop.permute.xlu0 %1047  ;;  %v804_v50 = vmul.f32 %v2686_v13, %v788_v3  ;;  %v790_v14 = vld [vmem:[#allocation3 + $0x18] sm:$0xff]  ;;  %v805_v47 = vmul.f32 %v2694_v17, %v789_v16 }
 0x2d1   : > { %v712_v52 = vpop.permute.xlu1 %711  ;;  %827 = vadd.xlane.f32.xlu0 %v1979_v58  ;;  %1747 = vmatprep.mubr.f32.mxu1 %v1979_v58 }
 0x2d2   : > { %1988 = vpow2.f32 %v771_v24  ;;  %v749_v32 = vsub.f32 %v2513_v60, %v712_v52  ;;  %1748 = vmatmul.mubr.f32.gmra.mrb[4].mxu1 %v1977_v61  ;;  %v806_v24 = vmul.f32 %v2671_v0, %v790_v14  ;;  %v802_v14 = vld [vmem:[#allocation3 + $0x78] sm:$0xff] }
 0x2d3   : > { %1990 = vpow2.f32 %v781_v41 }
 0x2d4   : > { %v1981_v63 = vpop.eup %1980  ;;  %v775_v36 = vmul.f32 1.442695, %v749_v32  ;;  %v2755_v28 = vpop.permute.xlu0 %1062 }
 0x2d5   : > { %v722_v18 = vpop.permute.xlu1 %721  ;;  %833 = vadd.xlane.f32.xlu1 %v1981_v63  ;;  %v1983_v26 = vpop.eup %1982 }
 0x2d6   : > { %1992 = vpow2.f32 %v775_v36  ;;  %v751_v56 = vsub.f32 %v2521_v1, %v722_v18  ;;  %v791_v18 = vld [vmem:[#allocation3 + $0x20] sm:$0xff] }
 0x2d7   : > { %1994 = vpow2.f32 %v785_v37  ;;  %v807_v0 = vmul.f32 %v2702_v21, %v791_v18  ;;  %v798_v21 = vld [vmem:[#allocation3 + $0x58] sm:$0xff] }
 0x2d8   : > { %v1985_v49 = vpop.eup %1984  ;;  %v779_v53 = vmul.f32 1.442695, %v751_v56  ;;  %v2759_v20 = vpop.permute.xlu0 %1072 }
 0x2d9   : > { %831 = vadd.xlane.f32.xlu0 %v1985_v49  ;;  %v732_v4 = vpop.permute.xlu1 %731  ;;  %837 = vadd.xlane.f32.xlu1 %v1983_v26  ;;  %v1987_v43 = vpop.eup %1986 }
 0x2da   : > { %1996 = vpow2.f32 %v779_v53  ;;  %v753_v60 = vsub.f32 %v2529_v6, %v732_v4  ;;  %1750 = vmatprep.mubr.f32.mxu1 %v1985_v49  ;;  %v655_v6 = vmul.f32 1.442695, %v625_v30  ;;  %v794_v49 = vld [vmem:[#allocation3 + $0x38] sm:$0xff] }
 0x2db   : > { %1751 = vmatmul.mubr.f32.gmra.mrb[6].mxu1 %v1981_v63  ;;  %v792_v63 = vld [vmem:[#allocation3 + $0x28] sm:$0xff]  ;;  %v810_v17 = vmul.f32 %v2684_v9, %v794_v49  ;;  %v814_v9 = vmul.f32 %v2700_v19, %v798_v21  ;;  %v799_v19 = vld [vmem:[#allocation3 + $0x60] sm:$0xff]  ;;  %v1032_v49 = vld [vmem:[#allocation4 + $0x18] sm:$0xff] }
 0x2dc   : > { %v1989_v57 = vpop.eup %1988  ;;  %v783_v42 = vmul.f32 1.442695, %v753_v60  ;;  %v2763_v35 = vpop.permute.xlu0 %1082  ;;  %v808_v13 = vmul.f32 %v2678_v7, %v792_v63  ;;  %v796_v60 = vld [vmem:[#allocation3 + $0x48] sm:$0xff] }
 0x2dd   : > { %835 = vadd.xlane.f32.xlu0 %v1989_v57  ;;  %841 = vadd.xlane.f32.xlu1 %v1987_v43  ;;  %v1991_v1 = vpop.eup %1990  ;;  %v2749_v40 = vpop.permute.xlu1 %1052  ;;  %v812_v7 = vmul.f32 %v2692_v15, %v796_v60  ;;  %v797_v15 = vld [vmem:[#allocation3 + $0x50] sm:$0xff] }
 0x2de   : > { %1998 = vpow2.f32 %v783_v42  ;;  %1753 = vmatprep.mubr.f32.mxu1 %v1989_v57 }
 0x2df   : > { %1754 = vmatmul.mubr.f32.gmra.mrb[8].mxu1 %v1983_v26  ;;  %2000 = vpow2.f32 %v655_v6 }
 0x2e0   : > { %v1993_v55 = vpop.eup %1992  ;;  %2002 = vpow2.f32 %v657_v2  ;;  %v2767_v62 = vpop.permute.xlu0 %1092 }
 0x2e1   : > { %839 = vadd.xlane.f32.xlu0 %v1993_v55  ;;  %845 = vadd.xlane.f32.xlu1 %v1991_v1  ;;  %v1995_v27 = vpop.eup %1994  ;;  %v2753_v30 = vpop.permute.xlu1 %1057 }
 0x2e2   : > { %1756 = vmatprep.mubr.f32.mxu1 %v1993_v55 }
 0x2e3   : > { %1757 = vmatmul.mubr.f32.gmra.mrb[10].mxu1 %v1987_v43  ;;  %v793_v43 = vld [vmem:[#allocation3 + $0x30] sm:$0xff] }
 0x2e4   : > { %v1997_v44 = vpop.eup %1996  ;;  %v2771_v38 = vpop.permute.xlu0 %1102  ;;  %v809_v42 = vmul.f32 %v2708_v23, %v793_v43 }
 0x2e5   : > { %843 = vadd.xlane.f32.xlu0 %v1997_v44  ;;  %849 = vadd.xlane.f32.xlu1 %v1995_v27  ;;  %v2757_v33 = vpop.permute.xlu1 %1067 }
 0x2e6   : > { %1759 = vmatprep.mubr.f32.mxu1 %v1997_v44 }
 0x2e7   : > { %1760 = vmatmul.mubr.f32.gmra.mrb[12].mxu1 %v1991_v1 }
 0x2e8   : > { %v1999_v29 = vpop.eup %1998  ;;  %v2776_v61 = vpop.permute.xlu0 %1112 }
 0x2e9   : > { %847 = vadd.xlane.f32.xlu0 %v1999_v29  ;;  %1762 = vmatprep.mubr.f32.mxu1 %v1999_v29  ;;  %v2743_v45 = vpop.eup %2000  ;;  %v2761_v34 = vpop.permute.xlu1 %1077 }
 0x2ea   : > { %v2746_v5 = vpop.eup %2002 }
 0x2eb   : > { %1763 = vmatmul.mubr.f32.gmra.mrb[14].mxu1 %v1995_v27  ;;  %v795_v27 = vld [vmem:[#allocation3 + $0x40] sm:$0xff] }
 0x2ec   : > { %v811_v29 = vmul.f32 %v2712_v12, %v795_v27 }
 0x2ed   : > { %v2765_v46 = vpop.permute.xlu1 %1087 }
 0x2f1   : > { %v2769_v31 = vpop.permute.xlu1 %1097 }
 0x2f5   : > { %v2773_v39 = vpop.permute.xlu1 %1107 }
 0x2f6   : > { %1117 = vperm.xlu1 %1905, %v2743_v45  }
 0x2ff   : > { %1122 = vperm.xlu0 %1904, %v2746_v5  }
 0x34a   : > { %v820_v54 = vpop.xlane.xlu1 %819 }
 0x34b   : > { %v851_v8 = vadd.f32 %v820_v54, %v803_v48  ;;  %v800_v48 = vld [vmem:[#allocation3 + $0x68] sm:$0xff] }
 0x34c   : > { %v816_v3 = vmul.f32 %v2706_v10, %v800_v48 }
 0x34d   : > { %868 = vst.msk [vmem:[#allocation3] sm:$0xff] %vm867_vm1, %v851_v8  ;;  %v813_v8 = vmul.f32 %v2715_v25, %v797_v15  ;;  %v1040_v15 = vld [vmem:[#allocation4 + $0x58] sm:$0xff] }
 0x34e   : > { %v822_v11 = vpop.xlane.xlu0 %821 }
 0x34f   : > { %v852_v58 = vadd.f32 %v822_v11, %v804_v50 }
 0x351   : > { %869 = vst.msk [vmem:[#allocation3 + $0x8] sm:$0xff] %vm867_vm1, %v852_v58 }
 0x352   : > { %v826_v41 = vpop.xlane.xlu1 %825 }
 0x353   : > { %v854_v52 = vadd.f32 %v826_v41, %v806_v24  ;;  %v818_v24 = vmul.f32 %v2746_v5, %v802_v14  ;;  %v815_v41 = vmul.f32 %v2718_v51, %v799_v19 }
 0x355   : > { %871 = vst.msk [vmem:[#allocation3 + $0x18] sm:$0xff] %vm867_vm1, %v854_v52 }
 0x356   : > { %v824_v32 = vpop.xlane.xlu0 %823 }
 0x357   : > { %v853_v36 = vadd.f32 %v824_v32, %v805_v47  ;;  %v801_v47 = vld [vmem:[#allocation3 + $0x70] sm:$0xff] }
 0x358   : > { %v817_v25 = vmul.f32 %v2743_v45, %v801_v47  ;;  %v1128_v45 = vmul.f32 %v2755_v28, %v1032_v49  ;;  %v1036_v28 = vld [vmem:[#allocation4 + $0x38] sm:$0xff] }
 0x359   : > { %870 = vst.msk [vmem:[#allocation3 + $0x10] sm:$0xff] %vm867_vm1, %v853_v36 }
 0x35a   : > { %v830_v37 = vpop.xlane.xlu1 %829 }
 0x35b   : > { %v856_v56 = vadd.f32 %v830_v37, %v808_v13  ;;  %v1030_v13 = vld [vmem:[#allocation4 + $0x8] sm:$0xff]  ;;  %v1029_v37 = vld [vmem:[#allocation4] sm:$0xff] }
 0x35c   : > { %v1126_v5 = vmul.f32 %v2749_v40, %v1030_v13  ;;  %v1125_v51 = vmul.f32 %v2751_v22, %v1029_v37  ;;  %v1034_v40 = vld [vmem:[#allocation4 + $0x28] sm:$0xff]  ;;  %v1033_v22 = vld [vmem:[#allocation4 + $0x20] sm:$0xff] }
 0x35d   : > { %873 = vst.msk [vmem:[#allocation3 + $0x28] sm:$0xff] %vm867_vm1, %v856_v56 }
 0x35e   : > { %v828_v26 = vpop.xlane.xlu0 %827 }
 0x35f   : > { %v855_v53 = vadd.f32 %v828_v26, %v807_v0 }
 0x361   : > { %872 = vst.msk [vmem:[#allocation3 + $0x20] sm:$0xff] %vm867_vm1, %v855_v53  ;;  %v1031_v53 = vld [vmem:[#allocation4 + $0x10] sm:$0xff] }
 0x362   : > { %v834_v4 = vpop.xlane.xlu1 %833 }
 0x363   : > { %v858_v57 = vadd.f32 %v834_v4, %v810_v17  ;;  %v1127_v17 = vmul.f32 %v2753_v30, %v1031_v53  ;;  %v1035_v30 = vld [vmem:[#allocation4 + $0x30] sm:$0xff] }
 0x365   : > { %875 = vst.msk [vmem:[#allocation3 + $0x38] sm:$0xff] %vm867_vm1, %v858_v57 }
 0x366   : > { %v838_v1 = vpop.xlane.xlu1 %837  ;;  %v832_v55 = vpop.xlane.xlu0 %831 }
 0x367   : > { %v860_v44 = vadd.f32 %v838_v1, %v812_v7  ;;  %v857_v6 = vadd.f32 %v832_v55, %v809_v42  ;;  %v1130_v7 = vmul.f32 %v2759_v20, %v1034_v40  ;;  %v1129_v42 = vmul.f32 %v2757_v33, %v1033_v22 }
 0x368   : > { %v1197_v49 = vld [vmem:[#allocation3 + $0x20] sm:$0xff] (!%p1583_p7) }
 0x369   : > { %877 = vst.msk [vmem:[#allocation3 + $0x48] sm:$0xff] %vm867_vm1, %v860_v44  ;;  %874 = vst.msk [vmem:[#allocation3 + $0x30] sm:$0xff] %vm867_vm1, %v857_v6  ;;  %v1132_v44 = vmul.f32 %v2763_v35, %v1036_v28  ;;  %v1038_v6 = vld [vmem:[#allocation4 + $0x48] sm:$0xff] }
 0x36a   : > { %v842_v2 = vpop.xlane.xlu1 %841  ;;  %v836_v59 = vpop.xlane.xlu0 %835  ;;  %v1134_v33 = vmul.f32 %v2767_v62, %v1038_v6 }
 0x36b   : > { %v862_v54 = vadd.f32 %v842_v2, %v814_v9  ;;  %v859_v23 = vadd.f32 %v836_v59, %v811_v29  ;;  %v1131_v9 = vmul.f32 %v2761_v34, %v1035_v30  ;;  %v1037_v2 = vld [vmem:[#allocation4 + $0x40] sm:$0xff]  ;;  %v1042_v34 = vld [vmem:[#allocation4 + $0x68] sm:$0xff] }
 0x36c   : > { %v1200_v53 = vld [vmem:[#allocation3 + $0x38] sm:$0xff] (!%p1583_p7) }
 0x36d   : > { %879 = vst.msk [vmem:[#allocation3 + $0x58] sm:$0xff] %vm867_vm1, %v862_v54  ;;  %876 = vst.msk [vmem:[#allocation3 + $0x40] sm:$0xff] %vm867_vm1, %v859_v23  ;;  %v1133_v54 = vmul.f32 %v2765_v46, %v1037_v2  ;;  %v1138_v46 = vmul.f32 %v2776_v61, %v1042_v34 }
 0x36e   : > { %v846_v50 = vpop.xlane.xlu1 %845  ;;  %v840_v11 = vpop.xlane.xlu0 %839 }
 0x36f   : > { %v864_v58 = vadd.f32 %v846_v50, %v816_v3  ;;  %v861_v12 = vadd.f32 %v840_v11, %v813_v8  ;;  %v1039_v3 = vld [vmem:[#allocation4 + $0x50] sm:$0xff]  ;;  %v1136_v11 = vmul.f32 %v2771_v38, %v1040_v15 }
 0x370   : > { %v1135_v14 = vmul.f32 %v2769_v31, %v1039_v3  ;;  %v1043_v38 = vld [vmem:[#allocation4 + $0x70] sm:$0xff] }
 0x371   : > { %881 = vst.msk [vmem:[#allocation3 + $0x68] sm:$0xff] %vm867_vm1, %v864_v58  ;;  %878 = vst.msk [vmem:[#allocation3 + $0x50] sm:$0xff] %vm867_vm1, %v861_v12  ;;  %v1041_v58 = vld [vmem:[#allocation4 + $0x60] sm:$0xff] }
 0x372   : > { %v850_v16 = vpop.xlane.xlu1 %849  ;;  %v844_v52 = vpop.xlane.xlu0 %843 }
 0x373   : > { %v866_v10 = vadd.f32 %v850_v16, %v818_v24  ;;  %v863_v32 = vadd.f32 %v844_v52, %v815_v41  ;;  %v1137_v41 = vmul.f32 %v2773_v39, %v1041_v58  ;;  %v1044_v16 = vld [vmem:[#allocation4 + $0x78] sm:$0xff]  ;;  %v1195_v39 = vld [vmem:[#allocation3 + $0x10] sm:$0xff] (!%p1583_p7) }
 0x374   : > { %2006 = vrcp.f32 (!%p1583_p7), %v1195_v39 }
 0x375   : > { %883 = vst.msk [vmem:[#allocation3 + $0x78] sm:$0xff] %vm867_vm1, %v866_v10  ;;  %880 = vst.msk [vmem:[#allocation3 + $0x60] sm:$0xff] %vm867_vm1, %v863_v32 }
 0x376   : > { %v848_v63 = vpop.xlane.xlu0 %847  ;;  %v1118_v10 = vpop.permute.xlu1 %1117 }
 0x377   : > { %v865_v36 = vadd.f32 %v848_v63, %v817_v25 }
 0x379   : > { %882 = vst.msk [vmem:[#allocation3 + $0x70] sm:$0xff] %vm867_vm1, %v865_v36  ;;  %v1139_v36 = vmul.f32 %v1118_v10, %v1043_v38 }
 0x37c   : > { %v1205_v6 = vld [vmem:[#allocation3 + $0x60] sm:$0xff] (!%p1583_p7) }
 0x37e   : > { %v1123_v52 = vpop.permute.xlu0 %1122 }
 0x37f   : > { %v1140_v63 = vmul.f32 %v1123_v52, %v1044_v16 }
 0x394   : > { %v1743_v18 = vpop.f32.mrb[0].mxu1 }
 0x395   : > { %v1142_v56 = vadd.f32 %v1743_v18, %v1126_v5  ;;  %v950_v0 = vpop.f32.mrb[1].mxu1  ;;  %v1196_v18 = vld [vmem:[#allocation3 + $0x18] sm:$0xff] (!%p1583_p7) }
 0x396   : > { %v1141_v26 = vadd.f32 %v1125_v51, %v950_v0  ;;  %v1193_v51 = vld [vmem:[#allocation3] sm:$0xff] (!%p1583_p7)  ;;  %v1194_v0 = vld [vmem:[#allocation3 + $0x8] sm:$0xff] (!%p1583_p7) }
 0x397   : > { %1158 = vst [vmem:[#allocation4 + $0x8] sm:$0xff] %v1142_v56  ;;  %v2224_v56 = vmov (!%p1583_p7), 0   ;;  %2008 = vrcp.f32 (!%p1583_p7), %v1193_v51 }
 0x398   : > { %1157 = vst [vmem:[#allocation4] sm:$0xff] %v1141_v26  ;;  %2005 = vset.pattern.permute.xlu1 (!%p1583_p7), %v2224_v56  ;;  %2004 = vset.pattern.permute.xlu0 (!%p1583_p7), %v2224_v56  ;;  %v1198_v26 = vld [vmem:[#allocation3 + $0x28] sm:$0xff] (!%p1583_p7)  ;;  %2010 = vrcp.f32 (!%p1583_p7), %v1196_v18 }
 0x399   : > { %2012 = vrcp.f32 (!%p1583_p7), %v1194_v0 }
 0x39a   : > { %2014 = vrcp.f32 (!%p1583_p7), %v1198_v26 }
 0x39b   : > { %2016 = vrcp.f32 (!%p1583_p7), %v1197_v49 }
 0x39c   : > { %2018 = vrcp.f32 (!%p1583_p7), %v1200_v53 }
 0x39d   : > { %v1746_v4 = vpop.f32.mrb[2].mxu1 }
 0x39e   : > { %v1144_v60 = vadd.f32 %v1746_v4, %v1128_v45  ;;  %v960_v43 = vpop.f32.mrb[3].mxu1  ;;  %v1199_v45 = vld [vmem:[#allocation3 + $0x30] sm:$0xff] (!%p1583_p7)  ;;  %v1201_v4 = vld [vmem:[#allocation3 + $0x40] sm:$0xff] (!%p1583_p7) }
 0x39f   : > { %v1143_v57 = vadd.f32 %v1127_v17, %v960_v43  ;;  %v1202_v17 = vld [vmem:[#allocation3 + $0x48] sm:$0xff] (!%p1583_p7)  ;;  %2020 = vrcp.f32 (!%p1583_p7), %v1199_v45  ;;  %v2007_v43 = vpop.eup (!%p1583_p7), %2006 }
 0x3a0   : > { %1160 = vst [vmem:[#allocation4 + $0x18] sm:$0xff] %v1144_v60  ;;  %2022 = vrcp.f32 (!%p1583_p7), %v1202_v17  ;;  %v1204_v60 = vld [vmem:[#allocation3 + $0x58] sm:$0xff] (!%p1583_p7)  ;;  %v1227_v22 = vmul.f32 (!%p1583_p7), %v2007_v43, %v1195_v39 }
 0x3a1   : > { %1159 = vst [vmem:[#allocation4 + $0x10] sm:$0xff] %v1143_v57  ;;  %2024 = vrcp.f32 (!%p1583_p7), %v1201_v4  ;;  %v1203_v57 = vld [vmem:[#allocation3 + $0x50] sm:$0xff] (!%p1583_p7)  ;;  %v2009_v40 = vpop.eup (!%p1583_p7), %2008 }
 0x3a2   : > { %2026 = vrcp.f32 (!%p1583_p7), %v1204_v60 }
 0x3a3   : > { %2028 = vrcp.f32 (!%p1583_p7), %v1203_v57 }
 0x3a5   : > { %v1749_v1 = vpop.f32.mrb[4].mxu1 }
 0x3a6   : > { %v1146_v55 = vadd.f32 %v1749_v1, %v1130_v7  ;;  %v970_v21 = vpop.f32.mrb[5].mxu1  ;;  %v2011_v7 = vpop.eup (!%p1583_p7), %2010 }
 0x3a7   : > { %v1145_v27 = vadd.f32 %v1129_v42, %v970_v21  ;;  %v1225_v42 = vmul.f32 (!%p1583_p7), %v2009_v40, %v1193_v51  ;;  %v2013_v1 = vpop.eup (!%p1583_p7), %2012  ;;  %v1228_v21 = vmul.f32 (!%p1583_p7), %v2011_v7, %v1196_v18 }
 0x3a8   : > { %1162 = vst [vmem:[#allocation4 + $0x28] sm:$0xff] %v1146_v55  ;;  %v1243_v55 = vsub.f32 (!%p1583_p7), 2.0, %v1227_v22  ;;  %v2015_v28 = vpop.eup (!%p1583_p7), %2014 }
 0x3a9   : > { %1161 = vst [vmem:[#allocation4 + $0x20] sm:$0xff] %v1145_v27  ;;  %v1206_v27 = vld [vmem:[#allocation3 + $0x68] sm:$0xff] (!%p1583_p7)  ;;  %v1241_v30 = vsub.f32 (!%p1583_p7), 2.0, %v1225_v42  ;;  %v1244_v2 = vsub.f32 (!%p1583_p7), 2.0, %v1228_v21  ;;  %v1275_v42 = vld [vmem:[#allocation4 + $0x10] sm:$0xff] (!%p1583_p7) }
 0x3aa   : > { %2030 = vrcp.f32 (!%p1583_p7), %v1206_v27 }
 0x3ab   : > { %2032 = vrcp.f32 (!%p1583_p7), %v1205_v6 }
 0x3ae   : > { %v1752_v29 = vpop.f32.mrb[6].mxu1 }
 0x3af   : > { %v1148_v59 = vadd.f32 %v1752_v29, %v1132_v44  ;;  %v980_v48 = vpop.f32.mrb[7].mxu1  ;;  %v1226_v44 = vmul.f32 (!%p1583_p7), %v2013_v1, %v1194_v0  ;;  %v1259_v29 = vmul.f32 (!%p1583_p7), %v2007_v43, %v1243_v55 }
 0x3b0   : > { %v1147_v20 = vadd.f32 %v1131_v9, %v980_v48  ;;  %v2017_v9 = vpop.eup (!%p1583_p7), %2016 }
 0x3b1   : > { %1164 = vst [vmem:[#allocation4 + $0x38] sm:$0xff] %v1148_v59  ;;  %v1230_v59 = vmul.f32 (!%p1583_p7), %v2015_v28, %v1198_v26  ;;  %v2019_v48 = vpop.eup (!%p1583_p7), %2018  ;;  %v1229_v15 = vmul.f32 (!%p1583_p7), %v2017_v9, %v1197_v49  ;;  %1301 = vperm.xlu1 (!%p1583_p7), %2005, %v1259_v29  }
 0x3b2   : > { %1163 = vst [vmem:[#allocation4 + $0x30] sm:$0xff] %v1147_v20  ;;  %v1755_v23 = vpop.f32.mrb[8].mxu1  ;;  %v1257_v20 = vmul.f32 (!%p1583_p7), %v2009_v40, %v1241_v30  ;;  %v1276_v30 = vld [vmem:[#allocation4 + $0x18] sm:$0xff] (!%p1583_p7) }
 0x3b3   : > { %v1150_v8 = vadd.f32 %v1755_v23, %v1134_v33  ;;  %v990_v50 = vpop.f32.mrb[9].mxu1  ;;  %v1242_v33 = vsub.f32 (!%p1583_p7), 2.0, %v1226_v44  ;;  %v1260_v23 = vmul.f32 (!%p1583_p7), %v2011_v7, %v1244_v2  ;;  %v1246_v3 = vsub.f32 (!%p1583_p7), 2.0, %v1230_v59 }
 0x3b4   : > { %v1149_v35 = vadd.f32 %v1133_v54, %v990_v50  ;;  %v2021_v54 = vpop.eup (!%p1583_p7), %2020  ;;  %v1208_v50 = vld [vmem:[#allocation3 + $0x78] sm:$0xff] (!%p1583_p7)  ;;  %1291 = vperm.xlu0 (!%p1583_p7), %2004, %v1257_v20   ;;  %v1245_v34 = vsub.f32 (!%p1583_p7), 2.0, %v1229_v15  ;;  %v1278_v20 = vld [vmem:[#allocation4 + $0x28] sm:$0xff] (!%p1583_p7)  ;;  %v1277_v15 = vld [vmem:[#allocation4 + $0x20] sm:$0xff] (!%p1583_p7) }
 0x3b5   : > { %1166 = vst [vmem:[#allocation4 + $0x48] sm:$0xff] %v1150_v8  ;;  %v1232_v8 = vmul.f32 (!%p1583_p7), %v2019_v48, %v1200_v53  ;;  %2034 = vrcp.f32 (!%p1583_p7), %v1208_v50  ;;  %1306 = vperm.xlu1 (!%p1583_p7), %2005, %v1260_v23  }
 0x3b6   : > { %1165 = vst [vmem:[#allocation4 + $0x40] sm:$0xff] %v1149_v35  ;;  %v1758_v19 = vpop.f32.mrb[10].mxu1  ;;  %v2023_v35 = vpop.eup (!%p1583_p7), %2022 }
 0x3b7   : > { %v1152_v62 = vadd.f32 %v1758_v19, %v1136_v11  ;;  %v1000_v12 = vpop.f32.mrb[11].mxu1  ;;  %v1258_v11 = vmul.f32 (!%p1583_p7), %v2013_v1, %v1242_v33  ;;  %v1207_v19 = vld [vmem:[#allocation3 + $0x70] sm:$0xff] (!%p1583_p7)  ;;  %v2025_v58 = vpop.eup (!%p1583_p7), %2024  ;;  %v1273_v1 = vld [vmem:[#allocation4] sm:$0xff] (!%p1583_p7) }
 0x3b8   : > { %v1151_v24 = vadd.f32 %v1135_v14, %v1000_v12  ;;  %v1231_v14 = vmul.f32 (!%p1583_p7), %v2021_v54, %v1199_v45  ;;  %v1248_v12 = vsub.f32 (!%p1583_p7), 2.0, %v1232_v8  ;;  %2036 = vrcp.f32 (!%p1583_p7), %v1207_v19 }
 0x3b9   : > { %1168 = vst [vmem:[#allocation4 + $0x58] sm:$0xff] %v1152_v62  ;;  %v1262_v62 = vmul.f32 (!%p1583_p7), %v2015_v28, %v1246_v3  ;;  %1296 = vperm.xlu0 (!%p1583_p7), %2004, %v1258_v11   ;;  %v1233_v52 = vmul.f32 (!%p1583_p7), %v2025_v58, %v1201_v4 }
 0x3ba   : > { %1167 = vst [vmem:[#allocation4 + $0x50] sm:$0xff] %v1151_v24  ;;  %v1761_v47 = vpop.f32.mrb[12].mxu1  ;;  %v1234_v24 = vmul.f32 (!%p1583_p7), %v2023_v35, %v1202_v17  ;;  %v1247_v16 = vsub.f32 (!%p1583_p7), 2.0, %v1231_v14  ;;  %v1264_v38 = vmul.f32 (!%p1583_p7), %v2019_v48, %v1248_v12 }
 0x3bb   : > { %v1154_v32 = vadd.f32 %v1761_v47, %v1138_v46  ;;  %v1010_v25 = vpop.f32.mrb[13].mxu1  ;;  %v2027_v46 = vpop.eup (!%p1583_p7), %2026  ;;  %1316 = vperm.xlu1 (!%p1583_p7), %2005, %v1262_v62  }
 0x3bc   : > { %v1153_v31 = vadd.f32 %v1137_v41, %v1010_v25  ;;  %1192 = sbr.rel (%p1583_p7) target bundleno = 1339 (0x53b), region = 52  ;;  %v1261_v41 = vmul.f32 (!%p1583_p7), %v2017_v9, %v1245_v34  ;;  %v2029_v47 = vpop.eup (!%p1583_p7), %2028  ;;  %v1250_v10 = vsub.f32 (!%p1583_p7), 2.0, %v1234_v24  ;;  %v1279_v34 = vld [vmem:[#allocation4 + $0x30] sm:$0xff] (!%p1583_p7)  ;;  %v1282_v24 = vld [vmem:[#allocation4 + $0x48] sm:$0xff] (!%p1583_p7) }
 0x3bd   : > { %1170 = vst [vmem:[#allocation4 + $0x68] sm:$0xff] %v1154_v32  ;;  %v1236_v32 = vmul.f32 (!%p1583_p7), %v2027_v46, %v1204_v60  ;;  %v2031_v25 = vpop.eup (!%p1583_p7), %2030 }
 0x3be   : > { %1169 = vst [vmem:[#allocation4 + $0x60] sm:$0xff] %v1153_v31  ;;  %v1764_v13 = vpop.f32.mrb[14].mxu1  ;;  %1311 = vperm.xlu0 (!%p1583_p7), %2004, %v1261_v41   ;;  %v1263_v31 = vmul.f32 (!%p1583_p7), %v2021_v54, %v1247_v16  ;;  %v1281_v41 = vld [vmem:[#allocation4 + $0x40] sm:$0xff] (!%p1583_p7) }
 0x3bf   : > { %v1156_v37 = vadd.f32 %v1764_v13, %v1140_v63  ;;  %v1020_v5 = vpop.f32.mrb[15].mxu1  ;;  %v1249_v63 = vsub.f32 (!%p1583_p7), 2.0, %v1233_v52  ;;  %v2033_v13 = vpop.eup (!%p1583_p7), %2032  ;;  %1326 = vperm.xlu1 (!%p1583_p7), %2005, %v1264_v38  }
 0x3c0   : > { %v1155_v61 = vadd.f32 %v1139_v36, %v1020_v5  ;;  %v1235_v36 = vmul.f32 (!%p1583_p7), %v2029_v47, %v1203_v57  ;;  %v1252_v5 = vsub.f32 (!%p1583_p7), 2.0, %v1236_v32  ;;  %v2035_v39 = vpop.eup (!%p1583_p7), %2034  ;;  %v1237_v56 = vmul.f32 (!%p1583_p7), %v2033_v13, %v1205_v6  ;;  %v1274_v6 = vld [vmem:[#allocation4 + $0x8] sm:$0xff] (!%p1583_p7) }
 0x3c1   : > { %1172 = vst [vmem:[#allocation4 + $0x78] sm:$0xff] %v1156_v37  ;;  %v1266_v37 = vmul.f32 (!%p1583_p7), %v2023_v35, %v1250_v10  ;;  %v1265_v51 = vmul.f32 (!%p1583_p7), %v2025_v58, %v1249_v63  ;;  %v1240_v53 = vmul.f32 (!%p1583_p7), %v2035_v39, %v1208_v50  ;;  %v1280_v35 = vld [vmem:[#allocation4 + $0x38] sm:$0xff] (!%p1583_p7) }
 0x3c2   : > { %1171 = vst [vmem:[#allocation4 + $0x70] sm:$0xff] %v1155_v61  ;;  %v1238_v61 = vmul.f32 (!%p1583_p7), %v2031_v25, %v1206_v27  ;;  %1321 = vperm.xlu0 (!%p1583_p7), %2004, %v1263_v31   ;;  %v1251_v18 = vsub.f32 (!%p1583_p7), 2.0, %v1235_v36  ;;  %v2037_v0 = vpop.eup (!%p1583_p7), %2036  ;;  %v1268_v26 = vmul.f32 (!%p1583_p7), %v2027_v46, %v1252_v5  ;;  %v1253_v17 = vsub.f32 (!%p1583_p7), 2.0, %v1237_v56  ;;  %v1284_v31 = vld [vmem:[#allocation4 + $0x58] sm:$0xff] (!%p1583_p7) }
 0x3c3   : > { %1336 = vperm.xlu1 %2005, %v1266_v37   ;;  %v1239_v4 = vmul.f32 %v2037_v0, %v1207_v19  ;;  %v1256_v43 = vsub.f32 2.0, %v1240_v53  ;;  %v1283_v37 = vld [vmem:[#allocation4 + $0x50] sm:$0xff] }
 0x3c4   : > { %v1254_v49 = vsub.f32 2.0, %v1238_v61  ;;  %v1267_v45 = vmul.f32 %v2029_v47, %v1251_v18  ;;  %v1269_v57 = vmul.f32 %v2033_v13, %v1253_v17  ;;  %v1286_v17 = vld [vmem:[#allocation4 + $0x68] sm:$0xff] }
 0x3c5   : > { %v1255_v40 = vsub.f32 2.0, %v1239_v4  ;;  %v1272_v22 = vmul.f32 %v2035_v39, %v1256_v43  ;;  %v1385_v39 = vld [vmem:[#allocation10] sm:$0xff] }
 0x3c6   : > { %1331 = vperm.xlu0 %2004, %v1265_v51   ;;  %v1270_v60 = vmul.f32 %v2031_v25, %v1254_v49  ;;  %v1386_v51 = vld [vmem:[#allocation10 + $0x8] sm:$0xff] }
 0x3c7   : > { %1346 = vperm.xlu1 %2005, %v1268_v26   ;;  %v1271_v7 = vmul.f32 %v2037_v0, %v1255_v40  ;;  %v1387_v0 = vld [vmem:[#allocation10 + $0x10] sm:$0xff] }
 0x3ca   : > { %1341 = vperm.xlu0 %2004, %v1267_v45  }
 0x3cb   : > { %1356 = vperm.xlu1 %2005, %v1270_v60  }
 0x3ce   : > { %1351 = vperm.xlu0 %2004, %v1269_v57  }
 0x3cf   : > { %1366 = vperm.xlu1 %2005, %v1272_v22   ;;  %v1285_v22 = vld [vmem:[#allocation4 + $0x60] sm:$0xff] }
 0x3d2   : > { %1361 = vperm.xlu0 %2004, %v1271_v7  }
 0x430   : > { %v1302_v55 = vpop.permute.xlu1 %1301 }
 0x431   : > { %v1371_v21 = vmul.f32 %v1302_v55, %v1275_v42 }
 0x433   : > { %v1292_v27 = vpop.permute.xlu0 %1291  ;;  %v1403_v44 = vadd.f32 1e-08, %v1371_v21 }
 0x434   : > { %v1369_v28 = vmul.f32 %v1292_v27, %v1273_v1  ;;  %v1307_v29 = vpop.permute.xlu1 %1306  ;;  %v1388_v1 = vld [vmem:[#allocation10 + $0x18] sm:$0xff] }
 0x435   : > { %v1372_v2 = vmul.f32 %v1307_v29, %v1276_v30  ;;  %v1288_v29 = vld [vmem:[#allocation4 + $0x78] sm:$0xff] }
 0x436   : > { %v1401_v9 = vadd.f32 1e-08, %v1369_v28  ;;  %v1389_v28 = vld [vmem:[#allocation10 + $0x20] sm:$0xff] }
 0x437   : > { %v1404_v33 = vadd.f32 1e-08, %v1372_v2 }
 0x438   : > { %v1297_v59 = vpop.permute.xlu0 %1296  ;;  %2038 = vlog2.f32 %v1401_v9 }
 0x439   : > { %v1370_v48 = vmul.f32 %v1297_v59, %v1274_v6  ;;  %2040 = vlog2.f32 %v1403_v44 }
 0x43a   : > { %v1317_v23 = vpop.permute.xlu1 %1316  ;;  %2042 = vlog2.f32 %v1404_v33 }
 0x43b   : > { %v1402_v54 = vadd.f32 1e-08, %v1370_v48  ;;  %v1374_v3 = vmul.f32 %v1317_v23, %v1278_v20  ;;  %v1390_v23 = vld [vmem:[#allocation10 + $0x28] sm:$0xff] }
 0x43d   : > { %v1312_v8 = vpop.permute.xlu0 %1311  ;;  %2044 = vlog2.f32 %v1402_v54  ;;  %v1406_v11 = vadd.f32 1e-08, %v1374_v3 }
 0x43e   : > { %v1373_v50 = vmul.f32 %v1312_v8, %v1277_v15  ;;  %v1327_v19 = vpop.permute.xlu1 %1326  ;;  %v1287_v15 = vld [vmem:[#allocation4 + $0x70] sm:$0xff] }
 0x43f   : > { %2046 = vlog2.f32 %v1406_v11  ;;  %v1376_v58 = vmul.f32 %v1327_v19, %v1280_v35  ;;  %v1391_v19 = vld [vmem:[#allocation10 + $0x30] sm:$0xff] }
 0x440   : > { %v1405_v14 = vadd.f32 1e-08, %v1373_v50 }
 0x441   : > { %v1322_v62 = vpop.permute.xlu0 %1321  ;;  %v1408_v46 = vadd.f32 1e-08, %v1376_v58 }
 0x442   : > { %2048 = vlog2.f32 %v1405_v14  ;;  %v1375_v12 = vmul.f32 %v1322_v62, %v1279_v34  ;;  %v2039_v16 = vpop.eup %2038  ;;  %v1337_v47 = vpop.permute.xlu1 %1336 }
 0x443   : > { %v2041_v38 = vpop.eup %2040  ;;  %2050 = vlog2.f32 %v1408_v46  ;;  %v1378_v10 = vmul.f32 %v1337_v47, %v1282_v24  ;;  %v1418_v36 = vmul.f32 0.6931472, %v2039_v16 }
 0x444   : > { %v1407_v52 = vadd.f32 1e-08, %v1375_v12  ;;  %v2043_v63 = vpop.eup %2042  ;;  %v1422_v61 = vmul.f32 0.6931472, %v2041_v38 }
 0x445   : > { %v1332_v32 = vpop.permute.xlu0 %1331  ;;  %v1410_v13 = vadd.f32 1e-08, %v1378_v10  ;;  %v1449_v60 = vmul.f32 %v1418_v36, %v1385_v39  ;;  %v1424_v43 = vmul.f32 0.6931472, %v2043_v63 }
 0x446   : > { %2052 = vlog2.f32 %v1407_v52  ;;  %v1377_v25 = vmul.f32 %v1332_v32, %v1281_v41  ;;  %v1347_v56 = vpop.permute.xlu1 %1346  ;;  %v1451_v42 = vmul.f32 %v1422_v61, %v1387_v0  ;;  %v1392_v52 = vld [vmem:[#allocation10 + $0x38] sm:$0xff] }
 0x447   : > { %v2045_v5 = vpop.eup %2044  ;;  %2054 = vlog2.f32 %v1410_v13  ;;  %v1380_v49 = vmul.f32 %v1347_v56, %v1284_v31  ;;  %v1452_v59 = vmul.f32 %v1424_v43, %v1388_v1  ;;  %v1397_v43 = vld [vmem:[#allocation10 + $0x60] sm:$0xff]  ;;  %v1398_v1 = vld [vmem:[#allocation10 + $0x68] sm:$0xff] }
 0x448   : > { %v1409_v18 = vadd.f32 1e-08, %v1377_v25  ;;  %v1420_v26 = vmul.f32 0.6931472, %v2045_v5  ;;  %v1393_v25 = vld [vmem:[#allocation10 + $0x40] sm:$0xff]  ;;  %v1394_v5 = vld [vmem:[#allocation10 + $0x48] sm:$0xff] }
 0x449   : > { %v1342_v53 = vpop.permute.xlu0 %1341  ;;  %v2047_v4 = vpop.eup %2046  ;;  %v1412_v40 = vadd.f32 1e-08, %v1380_v49 }
 0x44a   : > { %2056 = vlog2.f32 %v1409_v18  ;;  %v1379_v45 = vmul.f32 %v1342_v53, %v1283_v37  ;;  %v1450_v57 = vmul.f32 %v1420_v26, %v1386_v51  ;;  %v1357_v21 = vpop.permute.xlu1 %1356  ;;  %v1428_v20 = vmul.f32 0.6931472, %v2047_v4  ;;  %v1395_v18 = vld [vmem:[#allocation10 + $0x50] sm:$0xff] }
 0x44b   : > { %2058 = vlog2.f32 %v1412_v40  ;;  %v1382_v44 = vmul.f32 %v1357_v21, %v1286_v17 }
 0x44c   : > { %v2049_v7 = vpop.eup %2048  ;;  %v1411_v55 = vadd.f32 1e-08, %v1379_v45  ;;  %v1465_v27 = vadd.f32 %v1450_v57, %v1449_v60  ;;  %v1454_v12 = vmul.f32 %v1428_v20, %v1390_v23  ;;  %v1396_v45 = vld [vmem:[#allocation10 + $0x58] sm:$0xff] }
 0x44d   : > { %v1426_v30 = vmul.f32 0.6931472, %v2049_v7  ;;  %v1352_v6 = vpop.permute.xlu0 %1351  ;;  %v2051_v2 = vpop.eup %2050  ;;  %v1414_v33 = vadd.f32 1e-08, %v1382_v44 }
 0x44e   : > { %2060 = vlog2.f32 %v1411_v55  ;;  %v1381_v9 = vmul.f32 %v1352_v6, %v1285_v22  ;;  %v1466_v48 = vadd.f32 %v1465_v27, %v1451_v42  ;;  %v1367_v50 = vpop.permute.xlu1 %1366  ;;  %v1432_v46 = vmul.f32 0.6931472, %v2051_v2 }
 0x44f   : > { %v1453_v3 = vmul.f32 %v1426_v30, %v1389_v28  ;;  %2062 = vlog2.f32 %v1414_v33  ;;  %v1384_v34 = vmul.f32 %v1367_v50, %v1288_v29  ;;  %v1399_v28 = vld [vmem:[#allocation10 + $0x70] sm:$0xff] }
 0x450   : > { %v2053_v54 = vpop.eup %2052  ;;  %v1413_v8 = vadd.f32 1e-08, %v1381_v9  ;;  %v1467_v35 = vadd.f32 %v1466_v48, %v1452_v59  ;;  %v1456_v63 = vmul.f32 %v1432_v46, %v1392_v52  ;;  %v1400_v9 = vld [vmem:[#allocation10 + $0x78] sm:$0xff] }
 0x451   : > { %v1430_v11 = vmul.f32 0.6931472, %v2053_v54  ;;  %v1362_v14 = vpop.permute.xlu0 %1361  ;;  %v2055_v62 = vpop.eup %2054  ;;  %v1416_v41 = vadd.f32 1e-08, %v1384_v34 }
 0x452   : > { %2064 = vlog2.f32 %v1413_v8  ;;  %v1383_v58 = vmul.f32 %v1362_v14, %v1287_v15  ;;  %v1468_v24 = vadd.f32 %v1467_v35, %v1453_v3  ;;  %v1436_v13 = vmul.f32 0.6931472, %v2055_v62 }
 0x453   : > { %v1455_v10 = vmul.f32 %v1430_v11, %v1391_v19  ;;  %2066 = vlog2.f32 %v1416_v41 }
 0x454   : > { %v2057_v16 = vpop.eup %2056  ;;  %v1415_v47 = vadd.f32 1e-08, %v1383_v58  ;;  %v1469_v38 = vadd.f32 %v1468_v24, %v1454_v12  ;;  %v1458_v0 = vmul.f32 %v1436_v13, %v1394_v5 }
 0x455   : > { %v1434_v32 = vmul.f32 0.6931472, %v2057_v16  ;;  %v2059_v31 = vpop.eup %2058 }
 0x456   : > { %2068 = vlog2.f32 %v1415_v47  ;;  %v1470_v36 = vadd.f32 %v1469_v38, %v1455_v10  ;;  %v1440_v49 = vmul.f32 0.6931472, %v2059_v31 }
 0x457   : > { %v1457_v39 = vmul.f32 %v1434_v32, %v1393_v25 }
 0x458   : > { %v2061_v37 = vpop.eup %2060  ;;  %v1471_v61 = vadd.f32 %v1470_v36, %v1456_v63  ;;  %v1460_v40 = vmul.f32 %v1440_v49, %v1396_v45 }
 0x459   : > { %v1438_v51 = vmul.f32 0.6931472, %v2061_v37  ;;  %v2063_v56 = vpop.eup %2062 }
 0x45a   : > { %v1472_v26 = vadd.f32 %v1471_v61, %v1457_v39  ;;  %v1444_v7 = vmul.f32 0.6931472, %v2063_v56 }
 0x45b   : > { %v1459_v4 = vmul.f32 %v1438_v51, %v1395_v18 }
 0x45c   : > { %v2065_v53 = vpop.eup %2064  ;;  %v1473_v17 = vadd.f32 %v1472_v26, %v1458_v0  ;;  %v1462_v30 = vmul.f32 %v1444_v7, %v1398_v1 }
 0x45d   : > { %v1442_v60 = vmul.f32 0.6931472, %v2065_v53  ;;  %v2067_v57 = vpop.eup %2066 }
 0x45e   : > { %v1474_v22 = vadd.f32 %v1473_v17, %v1459_v4  ;;  %v1448_v44 = vmul.f32 0.6931472, %v2067_v57 }
 0x45f   : > { %v1461_v55 = vmul.f32 %v1442_v60, %v1397_v43 }
 0x460   : > { %v2069_v42 = vpop.eup %2068  ;;  %v1475_v27 = vadd.f32 %v1474_v22, %v1460_v40  ;;  %v1464_v59 = vmul.f32 %v1448_v44, %v1400_v9 }
 0x461   : > { %v1446_v21 = vmul.f32 0.6931472, %v2069_v42 }
 0x462   : > { %v1476_v6 = vadd.f32 %v1475_v27, %v1461_v55 }
 0x463   : > { %v1463_v29 = vmul.f32 %v1446_v21, %v1399_v28 }
 0x464   : > { %v1477_v2 = vadd.f32 %v1476_v6, %v1462_v30 }
 0x466   : > { %v1478_v48 = vadd.f32 %v1477_v2, %v1463_v29 }
 0x468   : > { %v1479_v20 = vadd.f32 %v1478_v48, %v1464_v59 }
 0x46a   : > { %1480 = vadd.xlane.f32.xlu0 %v1479_v20 }
 0x4f7   : > { %v1481_v33 = vpop.xlane.xlu0 %1480 }
 0x4f8   : > { %v1482_v15 = vrot.slane %v1481_v33, 4 }
 0x4fa   : > { %v1483_v54 = vadd.f32 %v1482_v15, %v1481_v33 }
 0x4fc   : > { %v1484_v23 = vrot.slane %v1483_v54, 2 }
 0x4fe   : > { %v1485_v3 = vadd.f32 %v1484_v23, %v1483_v54 }
 0x500   : > { %v1486_v8 = vrot.slane %v1485_v3, 1 }
 0x502   : > { %v1487_v50 = vadd.f32 %v1486_v8, %v1485_v3 }
 0x504   : > { %1829 = vpush %v1487_v50 }
 0x535   : > { %s1830_s22 = spop %1829 }
 0x536   : > { %s1489_s23 = smul.f32 -1.0, %s1830_s22 }
 0x538   : > { %s1490_s9 = smul.f32 0.0078125, %s1489_s23 }
 0x53a   : > { %1492 = sst [smem:[#allocation11]] %s1490_s9 }
 0x53b PF: > { %p1861_p11 = scmp.eq.s32.totalorder %s2265_s16, 2  ;;  %s2156_s30 = scalar_lea.hbm %s2853_s3, 16 }
 0x53c   : > { %p2157_p13 = scmp.ne.s32.totalorder %s2853_s3, %s2156_s30  ;;  %p2162_p10 = scmp.lt.u32.totalorder %s2156_s30, %s2853_s3 }
 0x53e   : > { %p2158_p12 = pnand %p2157_p13, %p1861_p11 }
 0x540   : > { %p2159_p8 = pneg %p2158_p12 }
 0x542   : > { %p2164_p0 = pnand %p2162_p10, %p2159_p8 }
 0x544   : > { %2167 = shalt.err (!%p2164_p0)
}
 0x545   : > { %s2225_s6 = smov [#allocation11]  }
 0x546   : > { %1842 = dma.smem_to_hbm (%p1861_p11), %s2225_s6, 16, %s2853_s3, [#allocation7]  }
 0x547   : > { %2197 = dma.done.wait (%p1861_p11), [#allocation7], 16  }
 0x548   : > { %2199 = vsyncadd (%p1861_p11), [#allocation7], 4294967280 }
 0x549   : > { %1506 = sfence }
 0x54a PF: > { %p15_p5 = scmp.ge.s32.totalorder %s2268_s17, 5   ;;  %s2871_s12 = smov %s2206_s13 }
 0x54b   : > { %s2872_s13 = smov %s2210_s14  ;;  %s2873_s14 = smov %s2278_s20 }
 0x54c   : > { %s2874_s15 = smov %s2268_s17  ;;  %17 = sbr.rel (!%p15_p5) target bundleno = 5 (0x5), region = 87 }
 0x553   :  { %1512 = vsyncpa [#allocation6], 1 }
 0x554   :  { %1514 = vsyncpa [#allocation6 + $0x1], 1 }
 0x555   :  { %1515 = vsyncpa [#allocation9], 1 }
 0x556   :  { %1517 = vsyncpa [#allocation9 + $0x1], 1 }
 0x557   :  { %1518 = vsyncpa [#allocation7], 1 }
 0x558   :  { %1520 = vsyncpa [#allocation7 + $0x1], 1 }

</bundles_post_ra>
